<compile_context>
chip_gen: v5e
topology: v5e:2x2
jax: 0.10.0
libtpu: 0.0.40
codegen_flags: <defaults>
</compile_context>

<pallas_src>
import functools

import jax
import jax.numpy as jnp
from jax import lax
from jax.experimental import pallas as pl
from jax.experimental.pallas import tpu as pltpu


def _round_up(x: int, m: int) -> int:
    return ((x + m - 1) // m) * m


# ---------------------------------------------------------------------------
# Pallas kernel: in-kernel im2col conv + folded-BN bias + ReLU for one
# (batch n, output-row tile r, Cout tile j) grid step.
# ---------------------------------------------------------------------------
def _conv_bn_relu_kernel(x_lo_ref, x_hi_ref, w_ref, b_ref, o_ref, *,
                         KH, KW, Cin, TH, W_out, sh, sw):
    # x_lo/x_hi: (1, TH*sh, W_pad, Cin) bf16 — two consecutive row blocks (halo)
    # w_ref    : (KH*KW*Cin, TN)        bf16 — BN-folded weight tile
    # b_ref    : (1, TN)                f32  — BN-folded bias tile
    # o_ref    : (TH*W_out, TN)         out dtype
    xwin = jnp.concatenate([x_lo_ref[0], x_hi_ref[0]], axis=0)   # (2*TH*sh, Wp, Cin)

    tn = o_ref.shape[1]
    # Bias-initialized f32 accumulator (no scratch, no extra epilogue add).
    acc = jnp.broadcast_to(b_ref[...], (TH * W_out, tn)).astype(jnp.float32)

    for kh in range(KH):
        for kw in range(KW):
            if sh == 1 and sw == 1:
                win = xwin[kh:kh + TH, kw:kw + W_out, :]
            else:
                # TODO(synk): strided-slice path (stride > 1) is not exercised
                # by the test below.
                win = lax.slice(
                    xwin, (kh, kw, 0),
                    (kh + (TH - 1) * sh + 1, kw + (W_out - 1) * sw + 1, Cin),
                    (sh, sw, 1))
            win2d = win.reshape(TH * W_out, Cin)
            wk = w_ref[(kh * KW + kw) * Cin:(kh * KW + kw + 1) * Cin, :]
            acc = acc + jnp.dot(win2d, wk, preferred_element_type=jnp.float32)

    o_ref[...] = jnp.maximum(acc, 0.0).astype(o_ref.dtype)


# ---------------------------------------------------------------------------
# Wrapper: conv(KHxKW, stride, padding, groups=1, dilation=1) + bias + ReLU
# ---------------------------------------------------------------------------
@functools.partial(jax.jit, static_argnames=("stride", "padding"))
def conv_bn_relu_pallas(x_nchw, w_oihw, bias_o, *, stride=(1, 1), padding=(1, 1)):
    """x: (N,Cin,H,W) f32; w: (Cout,Cin,KH,KW) BN-folded; bias: (Cout,) BN-folded."""
    N, Cin, H, W = x_nchw.shape
    Cout, Cin_w, KH, KW = w_oihw.shape
    assert Cin_w == Cin, "groups != 1 not supported"  # TODO(synk): grouped/dilated conv
    sh, sw = stride
    ph, pw = padding
    H_out = (H + 2 * ph - KH) // sh + 1
    W_out = (W + 2 * pw - KW) // sw + 1
    K = KH * KW * Cin
    Wp = W + 2 * pw

    # ---------------- tile selection ----------------
    Cout_pad = _round_up(Cout, 128)                 # lane-dense output stores
    if Cout_pad % 512 == 0:
        TN = 512
    elif Cout_pad % 256 == 0:
        TN = 256
    else:
        TN = 128

    TM_target = 1024                                 # rows of the implicit matmul
    TH = min(_round_up(H_out, 8),
             max(8, _round_up(TM_target // max(W_out, 1), 8)))   # output rows / tile

    def vmem_need(th, tn):
        thb = th * sh
        x_blk = thb * Wp * Cin * 2                   # bf16
        w_blk = K * tn * 2                           # bf16
        o_blk = th * W_out * tn * 4                  # f32
        # 2 halo specs x 2 buffers, weight/bias/out double-buffered,
        # plus in-kernel concat temp + f32 accumulator.
        return (2 * 2 * x_blk + 2 * w_blk + 2 * tn * 4 + 2 * o_blk
                + 2 * x_blk + o_blk)

    VMEM_BUDGET = 40 * 1024 * 1024                   # headroom under 64 MiB/TC (v7x)
    while vmem_need(TH, TN) > VMEM_BUDGET and TH > 8:
        TH -= 8
    while vmem_need(TH, TN) > VMEM_BUDGET and TN > 128:
        TN //= 2
    # TODO(synk): extremely wide images (W_out >~ 8k) would also need W tiling.

    R = pl.cdiv(H_out, TH)
    J = Cout_pad // TN
    # Guarantee >= 2 parallel output tiles so both v7x TensorCores get work.
    while N * R * J < 2 and TH > 8:
        TH -= 8
        R = pl.cdiv(H_out, TH)
    if N * R * J < 2 and TN > 128:
        TN //= 2
        J = Cout_pad // TN

    H_out_pad = R * TH
    THB = TH * sh                                    # input rows per halo block
    assert KH <= THB + sh, "kernel height too large for chosen row tile"
    Hp2 = (R + 1) * THB                              # padded input rows (halo-safe)
    TM = TH * W_out

    # ---------------- layout glue (plain JAX, fused by XLA) ----------------
    # TODO(synk): NCHW<->NHWC transposes stay wrapper-side to keep the PyTorch
    # module's layout contract; drop them if the surrounding model is NHWC.
    x = jnp.transpose(x_nchw, (0, 2, 3, 1))                       # NHWC
    x = jnp.pad(x, ((0, 0), (ph, Hp2 - H - ph), (pw, pw), (0, 0)))
    x = x.astype(jnp.bfloat16)                                    # bf16 MXU operand

    # weight: (Cout,Cin,KH,KW) -> (KH,KW,Cin,Cout) -> (K,Cout); rows ordered (kh,kw,ci)
    w_mat = jnp.transpose(w_oihw, (2, 3, 1, 0)).reshape(K, Cout)
    if Cout_pad != Cout:
        w_mat = jnp.pad(w_mat, ((0, 0), (0, Cout_pad - Cout)))
        b_mat = jnp.pad(bias_o, (0, Cout_pad - Cout)).reshape(1, Cout_pad)
    else:
        b_mat = bias_o.reshape(1, Cout_pad)
    w_mat = w_mat.astype(jnp.bfloat16)
    b_mat = b_mat.astype(jnp.float32)

    kernel = functools.partial(_conv_bn_relu_kernel, KH=KH, KW=KW, Cin=Cin,
                               TH=TH, W_out=W_out, sh=sh, sw=sw)

    cost = pl.CostEstimate(
        flops=2 * N * H_out_pad * W_out * Cout_pad * K,
        transcendentals=0,
        bytes_accessed=(2 * J * N * Hp2 * Wp * Cin * 2      # two halo reads x J
                        + K * Cout_pad * 2                   # weight once
                        + N * H_out_pad * W_out * Cout_pad * 4),
    )

    # Grid: Cout tiles outermost (weight tile DMA'd once, VMEM-resident across
    # all batch/row tiles), then batch, then output-row tiles.
    grid = (J, N, R)

    out2d = pl.pallas_call(
        kernel,
        out_shape=jax.ShapeDtypeStruct((N * H_out_pad * W_out, Cout_pad),
                                       x_nchw.dtype),
        grid_spec=pltpu.PrefetchScalarGridSpec(
            num_scalar_prefetch=0,
            grid=grid,
            in_specs=[
                # two consecutive halo row-blocks of the padded NHWC input
                pl.BlockSpec((1, THB, Wp, Cin), lambda j, n, r: (n, r, 0, 0)),
                pl.BlockSpec((1, THB, Wp, Cin), lambda j, n, r: (n, r + 1, 0, 0)),
                # BN-folded weight tile: depends only on j -> fetched once per j
                pl.BlockSpec((K, TN), lambda j, n, r: (0, j)),
                # BN-folded bias tile
                pl.BlockSpec((1, TN), lambda j, n, r: (0, j)),
            ],
            out_specs=pl.BlockSpec((TM, TN), lambda j, n, r: (n * R + r, j)),
        ),
        compiler_params=pltpu.CompilerParams(
            dimension_semantics=("parallel", "parallel", "parallel"),
            vmem_limit_bytes=48 * 1024 * 1024,
        ),
        cost_estimate=cost,
    )(x, x, w_mat, b_mat)

    out = out2d.reshape(N, H_out_pad, W_out, Cout_pad)[:, :H_out, :, :Cout]
    return jnp.transpose(out, (0, 3, 1, 2))                       # NCHW


# ---------------------------------------------------------------------------
# BatchNorm folding (mirrors ConvBatchNormReLU.__init__)
# ---------------------------------------------------------------------------
def fold_bn_into_conv(w_oihw, conv_bias, bn_weight, bn_bias, bn_mean, bn_var, eps):
    scale = bn_weight / jnp.sqrt(bn_var + eps)                    # (Cout,)
    w_folded = w_oihw * scale[:, None, None, None]
    if conv_bias is None:
        b_folded = -bn_mean * scale + bn_bias
    else:
        b_folded = (conv_bias - bn_mean) * scale + bn_bias
    return w_folded, b_folded


if __name__ == "__main__":
    key = jax.random.PRNGKey(0)
    k_x, k_w, k_g, k_b, k_m, k_v = jax.random.split(key, 6)

    N, Cin, H, W = 2, 4, 16, 16
    Cout, KH, KW = 8, 3, 3
    eps = 1e-5

    x = jax.random.normal(k_x, (N, Cin, H, W), dtype=jnp.float32)
    conv_w = jax.random.normal(k_w, (Cout, Cin, KH, KW), dtype=jnp.float32) * 0.1
    bn_weight = jax.random.normal(k_g, (Cout,), dtype=jnp.float32) * 0.5 + 1.0
    bn_bias = jax.random.normal(k_b, (Cout,), dtype=jnp.float32) * 0.1
    bn_mean = jax.random.normal(k_m, (Cout,), dtype=jnp.float32) * 0.1
    bn_var = jax.random.uniform(k_v, (Cout,), dtype=jnp.float32) * 0.5 + 0.5

    w_folded, b_folded = fold_bn_into_conv(conv_w, None, bn_weight, bn_bias,
                                           bn_mean, bn_var, eps)

    out = conv_bn_relu_pallas(x, w_folded, b_folded,
                              stride=(1, 1), padding=(1, 1))
    out = jax.block_until_ready(out)

    # Reference: XLA conv on the same bf16-quantized operands (the kernel runs
    # the MXU in bf16 with f32 accumulation), then bias + ReLU.
    x_bf = x.astype(jnp.bfloat16).astype(jnp.float32)
    w_bf = w_folded.astype(jnp.bfloat16).astype(jnp.float32)
    ref = lax.conv_general_dilated(
        x_bf, w_bf, window_strides=(1, 1), padding=((1, 1), (1, 1)),
        dimension_numbers=("NCHW", "OIHW", "NCHW"))
    ref = jnp.maximum(ref + b_folded[None, :, None, None], 0.0)

    assert out.shape == (N, Cout, H, W)
    err = float(jnp.max(jnp.abs(out - ref)))
    assert err < 1e-2, err

    print("KERNEL_OK")
</pallas_src>

<mosaic_0001>
module attributes {stable_mosaic.version = 11 : i64} {
  func.func @_conv_bn_relu_kernel(%arg0: i32, %arg1: i32, %arg2: i32, %arg3: memref<1x16x18x4xbf16, #tpu.memory_space<vmem>>, %arg4: memref<1x16x18x4xbf16, #tpu.memory_space<vmem>>, %arg5: memref<36x128xbf16, #tpu.memory_space<vmem>>, %arg6: memref<1x128xf32, #tpu.memory_space<vmem>>, %arg7: memref<256x128xf32, #tpu.memory_space<vmem>>) attributes {dimension_semantics = [#tpu.dimension_semantics<parallel>, #tpu.dimension_semantics<parallel>, #tpu.dimension_semantics<parallel>], iteration_bounds = array<i64: 1, 2, 1>, scalar_prefetch = 0 : i64, scratch_operands = 0 : i64, tpu.core_type = #tpu.core_type<tc>, window_params = [{transform_indices = @transform_0, window_bounds = array<i64: 1, 16, 18, 4>}, {transform_indices = @transform_1, window_bounds = array<i64: 1, 16, 18, 4>}, {transform_indices = @transform_2, window_bounds = array<i64: 36, 128>}, {transform_indices = @transform_3, window_bounds = array<i64: 1, 128>}, {transform_indices = @transform_4, window_bounds = array<i64: 256, 128>}]} {
    %c0 = arith.constant 0 : index
    %c0_0 = arith.constant 0 : index
    %c0_1 = arith.constant 0 : index
    %c0_2 = arith.constant 0 : index
    %0 = vector.load %arg3[%c0, %c0_0, %c0_1, %c0_2] : memref<1x16x18x4xbf16, #tpu.memory_space<vmem>>, vector<1x16x18x4xbf16>
    %1 = vector.shape_cast %0 : vector<1x16x18x4xbf16> to vector<16x18x4xbf16>
    %c0_3 = arith.constant 0 : index
    %c0_4 = arith.constant 0 : index
    %c0_5 = arith.constant 0 : index
    %c0_6 = arith.constant 0 : index
    %2 = vector.load %arg4[%c0_3, %c0_4, %c0_5, %c0_6] : memref<1x16x18x4xbf16, #tpu.memory_space<vmem>>, vector<1x16x18x4xbf16>
    %3 = vector.shape_cast %2 : vector<1x16x18x4xbf16> to vector<16x18x4xbf16>
    %4 = tpu.concatenate %1, %3 in 0 : vector<16x18x4xbf16>, vector<16x18x4xbf16> -> vector<32x18x4xbf16>
    %c0_7 = arith.constant 0 : index
    %c0_8 = arith.constant 0 : index
    %5 = vector.load %arg6[%c0_7, %c0_8] : memref<1x128xf32, #tpu.memory_space<vmem>>, vector<1x128xf32>
    %6 = vector.shape_cast %5 : vector<1x128xf32> to vector<1x128xf32>
    %7 = vector.broadcast %6 : vector<1x128xf32> to vector<256x128xf32>
    %8 = vector.extract_strided_slice %4 {offsets = [0, 0, 0], sizes = [16, 16, 4], strides = [1, 1, 1]} : vector<32x18x4xbf16> to vector<16x16x4xbf16>
    %9 = vector.shape_cast %8 : vector<16x16x4xbf16> to vector<256x4xbf16>
    %c0_9 = arith.constant 0 : index
    %c0_10 = arith.constant 0 : index
    %10 = vector.load %arg5[%c0_9, %c0_10] : memref<36x128xbf16, #tpu.memory_space<vmem>>, vector<4x128xbf16>
    %cst = arith.constant dense<0.000000e+00> : vector<256x128xf32>
    %11 = tpu.matmul %9, %10, %cst {dimension_numbers = #tpu.dot_dimension_numbers<[1], [0], [0], [1], [0, 0, 1, 1], [], []>} : vector<256x4xbf16>, vector<4x128xbf16>, vector<256x128xf32> -> vector<256x128xf32>
    %12 = arith.addf %7, %11 : vector<256x128xf32>
    %13 = vector.extract_strided_slice %4 {offsets = [0, 1, 0], sizes = [16, 16, 4], strides = [1, 1, 1]} : vector<32x18x4xbf16> to vector<16x16x4xbf16>
    %14 = vector.shape_cast %13 : vector<16x16x4xbf16> to vector<256x4xbf16>
    %c4 = arith.constant 4 : index
    %c0_11 = arith.constant 0 : index
    %15 = vector.load %arg5[%c4, %c0_11] : memref<36x128xbf16, #tpu.memory_space<vmem>>, vector<4x128xbf16>
    %cst_12 = arith.constant dense<0.000000e+00> : vector<256x128xf32>
    %16 = tpu.matmul %14, %15, %cst_12 {dimension_numbers = #tpu.dot_dimension_numbers<[1], [0], [0], [1], [0, 0, 1, 1], [], []>} : vector<256x4xbf16>, vector<4x128xbf16>, vector<256x128xf32> -> vector<256x128xf32>
    %17 = arith.addf %12, %16 : vector<256x128xf32>
    %18 = vector.extract_strided_slice %4 {offsets = [0, 2, 0], sizes = [16, 16, 4], strides = [1, 1, 1]} : vector<32x18x4xbf16> to vector<16x16x4xbf16>
    %19 = vector.shape_cast %18 : vector<16x16x4xbf16> to vector<256x4xbf16>
    %c8 = arith.constant 8 : index
    %c0_13 = arith.constant 0 : index
    %20 = vector.load %arg5[%c8, %c0_13] : memref<36x128xbf16, #tpu.memory_space<vmem>>, vector<4x128xbf16>
    %cst_14 = arith.constant dense<0.000000e+00> : vector<256x128xf32>
    %21 = tpu.matmul %19, %20, %cst_14 {dimension_numbers = #tpu.dot_dimension_numbers<[1], [0], [0], [1], [0, 0, 1, 1], [], []>} : vector<256x4xbf16>, vector<4x128xbf16>, vector<256x128xf32> -> vector<256x128xf32>
    %22 = arith.addf %17, %21 : vector<256x128xf32>
    %23 = vector.extract_strided_slice %4 {offsets = [1, 0, 0], sizes = [16, 16, 4], strides = [1, 1, 1]} : vector<32x18x4xbf16> to vector<16x16x4xbf16>
    %24 = vector.shape_cast %23 : vector<16x16x4xbf16> to vector<256x4xbf16>
    %c12 = arith.constant 12 : index
    %c0_15 = arith.constant 0 : index
    %25 = vector.load %arg5[%c12, %c0_15] : memref<36x128xbf16, #tpu.memory_space<vmem>>, vector<4x128xbf16>
    %cst_16 = arith.constant dense<0.000000e+00> : vector<256x128xf32>
    %26 = tpu.matmul %24, %25, %cst_16 {dimension_numbers = #tpu.dot_dimension_numbers<[1], [0], [0], [1], [0, 0, 1, 1], [], []>} : vector<256x4xbf16>, vector<4x128xbf16>, vector<256x128xf32> -> vector<256x128xf32>
    %27 = arith.addf %22, %26 : vector<256x128xf32>
    %28 = vector.extract_strided_slice %4 {offsets = [1, 1, 0], sizes = [16, 16, 4], strides = [1, 1, 1]} : vector<32x18x4xbf16> to vector<16x16x4xbf16>
    %29 = vector.shape_cast %28 : vector<16x16x4xbf16> to vector<256x4xbf16>
    %c16 = arith.constant 16 : index
    %c0_17 = arith.constant 0 : index
    %30 = vector.load %arg5[%c16, %c0_17] : memref<36x128xbf16, #tpu.memory_space<vmem>>, vector<4x128xbf16>
    %cst_18 = arith.constant dense<0.000000e+00> : vector<256x128xf32>
    %31 = tpu.matmul %29, %30, %cst_18 {dimension_numbers = #tpu.dot_dimension_numbers<[1], [0], [0], [1], [0, 0, 1, 1], [], []>} : vector<256x4xbf16>, vector<4x128xbf16>, vector<256x128xf32> -> vector<256x128xf32>
    %32 = arith.addf %27, %31 : vector<256x128xf32>
    %33 = vector.extract_strided_slice %4 {offsets = [1, 2, 0], sizes = [16, 16, 4], strides = [1, 1, 1]} : vector<32x18x4xbf16> to vector<16x16x4xbf16>
    %34 = vector.shape_cast %33 : vector<16x16x4xbf16> to vector<256x4xbf16>
    %c20 = arith.constant 20 : index
    %c0_19 = arith.constant 0 : index
    %35 = vector.load %arg5[%c20, %c0_19] : memref<36x128xbf16, #tpu.memory_space<vmem>>, vector<4x128xbf16>
    %cst_20 = arith.constant dense<0.000000e+00> : vector<256x128xf32>
    %36 = tpu.matmul %34, %35, %cst_20 {dimension_numbers = #tpu.dot_dimension_numbers<[1], [0], [0], [1], [0, 0, 1, 1], [], []>} : vector<256x4xbf16>, vector<4x128xbf16>, vector<256x128xf32> -> vector<256x128xf32>
    %37 = arith.addf %32, %36 : vector<256x128xf32>
    %38 = vector.extract_strided_slice %4 {offsets = [2, 0, 0], sizes = [16, 16, 4], strides = [1, 1, 1]} : vector<32x18x4xbf16> to vector<16x16x4xbf16>
    %39 = vector.shape_cast %38 : vector<16x16x4xbf16> to vector<256x4xbf16>
    %c24 = arith.constant 24 : index
    %c0_21 = arith.constant 0 : index
    %40 = vector.load %arg5[%c24, %c0_21] : memref<36x128xbf16, #tpu.memory_space<vmem>>, vector<4x128xbf16>
    %cst_22 = arith.constant dense<0.000000e+00> : vector<256x128xf32>
    %41 = tpu.matmul %39, %40, %cst_22 {dimension_numbers = #tpu.dot_dimension_numbers<[1], [0], [0], [1], [0, 0, 1, 1], [], []>} : vector<256x4xbf16>, vector<4x128xbf16>, vector<256x128xf32> -> vector<256x128xf32>
    %42 = arith.addf %37, %41 : vector<256x128xf32>
    %43 = vector.extract_strided_slice %4 {offsets = [2, 1, 0], sizes = [16, 16, 4], strides = [1, 1, 1]} : vector<32x18x4xbf16> to vector<16x16x4xbf16>
    %44 = vector.shape_cast %43 : vector<16x16x4xbf16> to vector<256x4xbf16>
    %c28 = arith.constant 28 : index
    %c0_23 = arith.constant 0 : index
    %45 = vector.load %arg5[%c28, %c0_23] : memref<36x128xbf16, #tpu.memory_space<vmem>>, vector<4x128xbf16>
    %cst_24 = arith.constant dense<0.000000e+00> : vector<256x128xf32>
    %46 = tpu.matmul %44, %45, %cst_24 {dimension_numbers = #tpu.dot_dimension_numbers<[1], [0], [0], [1], [0, 0, 1, 1], [], []>} : vector<256x4xbf16>, vector<4x128xbf16>, vector<256x128xf32> -> vector<256x128xf32>
    %47 = arith.addf %42, %46 : vector<256x128xf32>
    %48 = vector.extract_strided_slice %4 {offsets = [2, 2, 0], sizes = [16, 16, 4], strides = [1, 1, 1]} : vector<32x18x4xbf16> to vector<16x16x4xbf16>
    %49 = vector.shape_cast %48 : vector<16x16x4xbf16> to vector<256x4xbf16>
    %c32 = arith.constant 32 : index
    %c0_25 = arith.constant 0 : index
    %50 = vector.load %arg5[%c32, %c0_25] : memref<36x128xbf16, #tpu.memory_space<vmem>>, vector<4x128xbf16>
    %cst_26 = arith.constant dense<0.000000e+00> : vector<256x128xf32>
    %51 = tpu.matmul %49, %50, %cst_26 {dimension_numbers = #tpu.dot_dimension_numbers<[1], [0], [0], [1], [0, 0, 1, 1], [], []>} : vector<256x4xbf16>, vector<4x128xbf16>, vector<256x128xf32> -> vector<256x128xf32>
    %52 = arith.addf %47, %51 : vector<256x128xf32>
    %cst_27 = arith.constant 0.000000e+00 : f32
    %53 = vector.broadcast %cst_27 : f32 to vector<256x128xf32>
    %54 = arith.maximumf %52, %53 : vector<256x128xf32>
    %c0_28 = arith.constant 0 : index
    %c0_29 = arith.constant 0 : index
    %55 = vector.load %arg7[%c0_28, %c0_29] : memref<256x128xf32, #tpu.memory_space<vmem>>, vector<256x128xf32>
    tpu.vector_store %arg7[%c0_28, %c0_29], %54 {strides = array<i32>} : memref<256x128xf32, #tpu.memory_space<vmem>>, vector<256x128xf32>,
    return
  }
  func.func @transform_0(%arg0: i32, %arg1: i32, %arg2: i32) -> (i32, i32, i32, i32) {
    %c0_i32 = arith.constant 0 : i32
    %c0_i32_0 = arith.constant 0 : i32
    %c0_i32_1 = arith.constant 0 : i32
    return %arg1, %arg2, %c0_i32, %c0_i32_0 : i32, i32, i32, i32
  }
  func.func @transform_1(%arg0: i32, %arg1: i32, %arg2: i32) -> (i32, i32, i32, i32) {
    %c1_i32 = arith.constant 1 : i32
    %0 = arith.addi %arg2, %c1_i32 : i32
    %c0_i32 = arith.constant 0 : i32
    %c0_i32_0 = arith.constant 0 : i32
    %c0_i32_1 = arith.constant 0 : i32
    return %arg1, %0, %c0_i32, %c0_i32_0 : i32, i32, i32, i32
  }
  func.func @transform_2(%arg0: i32, %arg1: i32, %arg2: i32) -> (i32, i32) {
    %c0_i32 = arith.constant 0 : i32
    %c0_i32_0 = arith.constant 0 : i32
    return %c0_i32, %arg0 : i32, i32
  }
  func.func @transform_3(%arg0: i32, %arg1: i32, %arg2: i32) -> (i32, i32) {
    %c0_i32 = arith.constant 0 : i32
    %c0_i32_0 = arith.constant 0 : i32
    return %c0_i32, %arg0 : i32, i32
  }
  func.func @transform_4(%arg0: i32, %arg1: i32, %arg2: i32) -> (i32, i32) {
    %c1_i32 = arith.constant 1 : i32
    %0 = arith.muli %arg1, %c1_i32 : i32
    %1 = arith.addi %0, %arg2 : i32
    %c0_i32 = arith.constant 0 : i32
    return %1, %arg0 : i32, i32
  }
}

</mosaic_0001>

<bundles_post_ra>
// kernel: conv_bn_relu_pallas.1
= control target key start
LH: loop header
LB: loop body
LE: loop exit
PB: predicated region body
PF: predicated region fallthrough
CT: control target
= control target key end

     0   :  { %s3034_s15 = smov 0   ;;  %s3036_s16 = smov 0   ;;  %s4201_s0 = inlined_call_operand.vmem [shape: bf16[2,32,18,4], index: 0, kind: input, shape index: {}, may-alias: {0,1}]   ;;  %s4202_s1 = inlined_call_operand.vmem [shape: bf16[2,32,18,4], index: 1, kind: input, shape index: {}, may-alias: {0,1}]   ;;  %s4203_s2 = inlined_call_operand.vmem [shape: bf16[36,128], index: 2, kind: input, shape index: {}]   ;;  %s4204_s3 = inlined_call_operand.vmem [shape: f32[1,128], index: 3, kind: input, shape index: {}]   ;;  %s4205_s4 = inlined_call_operand.vmem [shape: f32[512,128], index: 4, kind: output, shape index: {}]  }
   0x1   :  { %s3038_s17 = smov 0  }
   0x2 LB: > { %s29_s18 = sadd.s32 1, %s3003_s16  ;;  %p2679_p0 = scmp.ge.s32.totalorder %s3007_s17, 1  ;;  %s3007_s17 = sphi %s3038_s17, %s14_s17   ;;  %s3003_s16 = sphi %s3036_s16, %s4291_s16   ;;  %s2999_s15 = sphi %s3034_s15, %s4290_s15  }
   0x3   : > { %p31_p1 = scmp.ge.s32.totalorder %s29_s18, 2  ;;  %p232_p2 = scmp.lt.s32.totalorder %s3007_s17, 3 }
   0x5   : > { %s4293_s18 = smov (%p31_p1, %s29_s18), 0  ;;  %p233_p3 = pnand %p2679_p0, %p232_p2 }
   0x7   : > { %236 = sbr.rel (%p233_p3) target bundleno = 729 (0x2d9), region = 36 }
   0xc   : > { %v386_v0 = vld [vmem:[%s4203_s2] sm:$0x3]  ;;  %vm516_vm0 = vcmask 1041408   ;;  %p286_p4 = scmp.lt.s32.totalorder %s2999_s15, 1  ;;  %v1384_v2 = vld [vmem:[%s4203_s2 + $0x4] sm:$0x3] }
   0xd   : > { %v518_v1 = vsel %vm516_vm0, %v386_v0, 0  ;;  %v1605_v3 = vld [vmem:[%s4203_s2 + $0x4] sm:$0xc]  ;;  %v1482_v4 = vsel %vm516_vm0, %v1384_v2, 0  ;;  %v1028_v6 = vld [vmem:[%s4203_s2] sm:$0xc] }
   0xe   : > { %2940 = vmatpush.bf16.msra.mxu1 %v518_v1  ;;  %2941 = vmatpush.bf16.msra.mxu2 %v518_v1  ;;  %s3066_s25 = scalar_select %p286_p4, %s2999_s15, 1  ;;  %v1612_v5 = vunpack.c.l.b16 %v1605_v3  ;;  %v1766_v7 = vld [vmem:[%s4203_s2 + $0x8] sm:$0x3]  ;;  %v1078_v8 = vunpack.c.l.b16 %v1028_v6  ;;  %vm467_vm1 = vcmask 31744   ;;  %v2040_v32 = vld [vmem:[%s4203_s2 + $0xc] sm:$0x3] }
   0xf   : > { %2942 = vmatpush.bf16.msra.mxu3 %v518_v1  ;;  %527 = vmatpush.bf16.msra.mxu0 %v518_v1  ;;  %v1774_v9 = vsel %vm516_vm0, %v1766_v7, 0  ;;  %v2197_v33 = vld [vmem:[%s4203_s2 + $0xc] sm:$0xc]  ;;  %v1905_v34 = vld [vmem:[%s4203_s2 + $0x8] sm:$0xc]  ;;  %v2050_v35 = vsel %vm516_vm0, %v2040_v32, 0 }
  0x10   : > { %s2943_s30 = smul.u32 384, %s3066_s25  ;;  %v1613_v10 = vpack.c.b16 %v1612_v5, %v1612_v5  ;;  %v1079_v11 = vpack.c.b16 %v1078_v8, %v1078_v8  ;;  %v2202_v37 = vunpack.c.l.b16 %v2197_v33  ;;  %v1910_v38 = vunpack.c.l.b16 %v1905_v34  ;;  %v2340_v39 = vld [vmem:[%s4203_s2 + $0x10] sm:$0x3]  ;;  %s2682_s25 = sshll.u32 %s2999_s15, 5 }
  0x11   : > { %v2348_v43 = vsel %vm516_vm0, %v2340_v39, 0  ;;  %vm641_vm2 = vsmask.f32 3328  ;;  %vm642_vm3 = vsmask.f32 7440  ;;  %vm1269_vm4 = vcmask 1042432  }
  0x12   : > { %1491 = vmatpush.bf16.msrb.mxu2 %v1482_v4  ;;  %s3082_s7 = scalar_lea.vmem %s4201_s0, %s2943_s30  ;;  %v1614_v12 = vrot.slane %v1613_v10, 2  ;;  %v1080_v16 = vrot.slane %v1079_v11, 2  ;;  %v2203_v44 = vpack.c.b16 %v2202_v37, %v2202_v37  ;;  %v1911_v45 = vpack.c.b16 %v1910_v38, %v1910_v38  ;;  %vm3186_vm6 = vmor %vm641_vm2, %vm642_vm3  ;;  %s2921_s22 = sadd.s32 192, %s2943_s30 }
  0x13   : > { %1783 = vmatpush.bf16.msrb.mxu0 %v1774_v9  ;;  %v3085_v13 = vld [vmem:[%s3082_s7 + $0x30] sm:$0xff]  ;;  %v3088_v14 = vld [vmem:[%s3082_s7 + $0x60] sm:$0xff]  ;;  %v3118_v24 = vld [vmem:[%s3082_s7 + $0x48] sm:$0xff]  ;;  %vm1270_vm5 = vcmask 1046532   ;;  %s3835_s26 = scalar_lea.vmem %s4202_s1, %s2921_s22  ;;  %p318_p5 = scmp.lt.s32.totalorder %s2682_s25, 63 }
  0x14   : > { %v2934_v15 = vld [vmem:[%s3082_s7 + $0x90] sm:$0xff]  ;;  %v2922_v17 = vld [vmem:[%s3082_s7] sm:$0xff]  ;;  %v1619_v18 = vsel %vm516_vm0, %v1614_v12, 0  ;;  %2752 = vmatmul.msk.bf16.vlgmr.msra.gmra.mxu1 %vm467_vm1, %v3085_v13  ;;  %2756 = vmatmul.msk.bf16.vlgmr.msra.gmra.mxu2 %vm467_vm1, %v3088_v14  ;;  %v1130_v19 = vsel %vm516_vm0, %v1080_v16, 0  ;;  %v3121_v25 = vld [vmem:[%s3082_s7 + $0x78] sm:$0xff]  ;;  %v2204_v53 = vrot.slane %v2203_v44, 2 }
  0x15   : > { %2760 = vmatmul.msk.bf16.vlgmr.msra.gmra.mxu3 %vm467_vm1, %v2934_v15  ;;  %2748 = vmatmul.msk.bf16.vlgmr.msra.gmra.mxu0 %vm467_vm1, %v2922_v17  ;;  %v3101_v20 = vld [vmem:[%s3082_s7 + $0x3c] sm:$0xff]  ;;  %v3104_v21 = vld [vmem:[%s3082_s7 + $0x6c] sm:$0xff]  ;;  %v3135_v29 = vld [vmem:[%s3082_s7 + $0x4] sm:$0xf]  ;;  %v1912_v54 = vrot.slane %v1911_v45, 2  ;;  %s4295_s25 = smov (!%p318_p5, %s2682_s25), 63 }
  0x16   : > { %1628 = vmatpush.bf16.msrb.mxu3 %v1619_v18  ;;  %1139 = vmatpush.bf16.msrb.mxu1 %v1130_v19  ;;  %v2935_v22 = vld [vmem:[%s3082_s7 + $0x9c] sm:$0xff]  ;;  %v3108_v23 = vld [vmem:[%s3082_s7 + $0xc] sm:$0xff]  ;;  %v654_v40 = vshll.u32 %v3135_v29, 16  ;;  %v658_v41 = vshrl.u32 %v3135_v29, 16  ;;  %v330_v50 = vld [vmem:[%s3082_s7 + $0x8] sm:$0x1] }
  0x17   : > { %v2936_v26 = vld [vmem:[%s3082_s7 + $0xa8] sm:$0xff]  ;;  %v3125_v27 = vld [vmem:[%s3082_s7 + $0x18] sm:$0xff]  ;;  %v3128_v28 = vld [vmem:[%s3082_s7] sm:$0xf]  ;;  %2059 = vmatpush.bf16.msra.mxu2 %v2050_v35  ;;  %2357 = vmatpush.bf16.msra.mxu0 %v2348_v43  ;;  %v2209_v57 = vsel %vm516_vm0, %v2204_v53, 0  ;;  %v1917_v58 = vsel %vm516_vm0, %v1912_v54, 0 }
  0x18   : > { %v645_v30 = vshrl.u32 %v3128_v28, 16  ;;  %v648_v31 = vshll.u32 %v3128_v28, 16  ;;  %v3153_v36 = vld [vmem:[%s3082_s7 + $0xc] sm:$0xf]  ;;  %v3161_v42 = vld [vmem:[%s3082_s7 + $0x10] sm:$0xf]  ;;  %vm3195_vm7 = vmor %vm1269_vm4, %vm1270_vm5 }
  0x19   : > { %v669_v48 = vshrl.u32 %v3153_v36, 16  ;;  %v672_v49 = vshll.u32 %v3153_v36, 16  ;;  %v678_v51 = vshll.u32 %v3161_v42, 16  ;;  %v682_v52 = vshrl.u32 %v3161_v42, 16  ;;  %v3173_v3 = vld [vmem:[%s3082_s7 + $0x14] sm:$0x1] }
  0x1a   : > { %v647_v46 = vrot.slane %v645_v30, 4  ;;  %v650_v47 = vrot.slane %v648_v31, 5  ;;  %v656_v55 = vrot.slane %v654_v40, 5  ;;  %v660_v56 = vrot.slane %v658_v41, 4  ;;  %2218 = vmatpush.bf16.msra.mxu3 %v2209_v57  ;;  %1926 = vmatpush.bf16.msra.mxu1 %v1917_v58  ;;  %v3176_v4 = vld [vmem:[%s3082_s7 + $0x54] sm:$0xff]  ;;  %v3179_v5 = vld [vmem:[%s3082_s7 + $0x84] sm:$0xff] }
  0x1b   : > { %v664_v60 = vshll.u32 %v330_v50, 16  ;;  %v671_v61 = vrot.slane %v669_v48, 4  ;;  %v674_v62 = vrot.slane %v672_v49, 5  ;;  %v680_v63 = vrot.slane %v678_v51, 5  ;;  %v2937_v6 = vld [vmem:[%s3082_s7 + $0xb4] sm:$0xff]  ;;  %v3183_v7 = vld [vmem:[%s3082_s7 + $0x24] sm:$0xff] }
  0x1c   : > { %v651_v59 = vor.u32 %v650_v47, %v647_v46  ;;  %v684_v0 = vrot.slane %v682_v52, 4  ;;  %v661_v1 = vor.u32 %v660_v56, %v656_v55  ;;  %v1274_v2 = vrot.slane %v3135_v29, 5  ;;  %v336_v54 = vld [vmem:[%s3082_s7 + $0x20] sm:$0x1]  ;;  %s2683_s15 = sshll.u32 %s4295_s25, 3 }
  0x1d   : > { %v666_v8 = vrot.slane %v664_v60, 5  ;;  %v675_v10 = vor.u32 %v674_v62, %v671_v61  ;;  %v688_v12 = vshll.u32 %v3173_v3, 16  ;;  %v2780_v17 = vrot.slane %v3128_v28, 9  ;;  %v3206_v28 = vld [vmem:[%s3082_s7 + $0x1c] sm:$0xf]  ;;  %s4057_s29 = scalar_lea.vmem %s4205_s4, %s2683_s15 }
  0x1e   : > { %v652_v9 = vrot.slane %v651_v59, 4  ;;  %v685_v11 = vor.u32 %v684_v0, %v680_v63  ;;  %v662_v16 = vrot.slane %v661_v1, 4  ;;  %v1276_v18 = vrot.slane %v1274_v2, 4 }
  0x1f   : > { %v1277_v19 = vrot.slane %v330_v50, 5  ;;  %v676_v29 = vrot.slane %v675_v10, 4  ;;  %v690_v31 = vrot.slane %v688_v12, 5  ;;  %v1275_v34 = vsel %vm3195_vm7, %v2780_v17, %v1274_v2 }
  0x20   : > { %v686_v30 = vrot.slane %v685_v11, 4  ;;  %v657_v32 = vsel %vm3186_vm6, %v652_v9, %v656_v55  ;;  %v667_v33 = vsel %vm3186_vm6, %v662_v16, %v666_v8  ;;  %v702_v39 = vshll.u32 %v3206_v28, 16  ;;  %v3237_v8 = vld [vmem:[%s3082_s7 + $0x28] sm:$0xf] }
  0x21   : > { %v1278_v35 = vsel %vm3195_vm7, %v1276_v18, %v1277_v19  ;;  %v706_v40 = vshrl.u32 %v3206_v28, 16  ;;  %v681_v41 = vsel %vm3186_vm6, %v676_v29, %v680_v63  ;;  %v1029_v44 = vunpack.c.l.b16 %v657_v32 }
  0x22   : > { %v691_v43 = vsel %vm3186_vm6, %v686_v30, %v690_v31  ;;  %v1030_v45 = vunpack.c.l.b16 %v667_v33  ;;  %v1385_v46 = vunpack.c.l.b16 %v1275_v34  ;;  %v1386_v47 = vunpack.c.l.b16 %v1278_v35  ;;  %v339_v34 = vld [vmem:[%s3082_s7 + $0x2c] sm:$0x1] }
  0x23   : > { %v704_v50 = vrot.slane %v702_v39, 5  ;;  %v708_v51 = vrot.slane %v706_v40, 4  ;;  %v1031_v52 = vunpack.c.l.b16 %v681_v41  ;;  %v1032_v53 = vunpack.c.l.b16 %v691_v43 }
  0x24   : > { %2753 = vmatmul.msk.bf16.gmra.mxu1 %vm467_vm1, %v3101_v20  ;;  %2757 = vmatmul.msk.bf16.gmra.mxu2 %vm467_vm1, %v3104_v21  ;;  %v1061_v55 = vpack.c.b16 %v1030_v45, %v1029_v44  ;;  %v1281_v56 = vrot.slane %v3161_v42, 5  ;;  %v1417_v57 = vpack.c.b16 %v1386_v47, %v1385_v46  ;;  %v712_v60 = vshll.u32 %v336_v54, 16  ;;  %v3234_v42 = vld [vmem:[%s3082_s7 + $0x24] sm:$0xf] }
  0x25   : > { %2761 = vmatmul.msk.bf16.gmra.mxu3 %vm467_vm1, %v2935_v22  ;;  %2749 = vmatmul.msk.bf16.gmra.mxu0 %vm467_vm1, %v3108_v23  ;;  %v709_v59 = vor.u32 %v708_v51, %v704_v50  ;;  %v1062_v61 = vpack.c.b16 %v1032_v53, %v1031_v52  ;;  %v2781_v62 = vrot.slane %v3153_v36, 9  ;;  %v1284_v0 = vrot.slane %v3173_v3, 5 }
  0x26   : > { %v1283_v63 = vrot.slane %v1281_v56, 4  ;;  %v720_v11 = vshll.u32 %v3234_v42, 16  ;;  %v726_v12 = vshll.u32 %v3237_v8, 16  ;;  %v730_v16 = vshrl.u32 %v3237_v8, 16 }
  0x27   : > { %v710_v2 = vrot.slane %v709_v59, 4  ;;  %v1282_v36 = vsel %vm3195_vm7, %v2781_v62, %v1281_v56  ;;  %v736_v41 = vshll.u32 %v339_v34, 16 }
  0x28   : > { %v1285_v9 = vsel %vm3195_vm7, %v1283_v63, %v1284_v0  ;;  %v1387_v17 = vunpack.c.l.b16 %v1282_v36  ;;  %v722_v31 = vrot.slane %v720_v11, 5  ;;  %v728_v32 = vrot.slane %v726_v12, 5  ;;  %v3302_v12 = vld [vmem:[%s3082_s7 + $0x40] sm:$0xf] }
  0x29   : > { %v1388_v18 = vunpack.c.l.b16 %v1285_v9  ;;  %v732_v33 = vrot.slane %v730_v16, 4  ;;  %v738_v47 = vrot.slane %v736_v41, 5  ;;  %v1295_v0 = vrot.slane %v3237_v8, 5  ;;  %v3299_v8 = vld [vmem:[%s3082_s7 + $0x3c] sm:$0xf] }
  0x2a   : > { %v1298_v11 = vrot.slane %v339_v34, 5 }
  0x2b   : > { %v3252_v35 = vpack.c.b16 %v1388_v18, %v1387_v17  ;;  %v733_v40 = vor.u32 %v732_v33, %v728_v32 }
  0x2d   : > { %v734_v46 = vrot.slane %v733_v40, 4 }
  0x2f   : > { %v739_v51 = vsel %vm3186_vm6, %v734_v46, %v738_v47 }
  0x30   : > { %v1036_v59 = vunpack.c.l.b16 %v739_v51 }
  0x34   : > { %2754 = vmatmul.msk.bf16.gmra.mxu1 %vm467_vm1, %v3118_v24  ;;  %2758 = vmatmul.msk.bf16.gmra.mxu2 %vm467_vm1, %v3121_v25 }
  0x35   : > { %2762 = vmatmul.msk.bf16.gmra.mxu3 %vm467_vm1, %v2936_v26  ;;  %2750 = vmatmul.msk.bf16.gmra.mxu0 %vm467_vm1, %v3125_v27  ;;  %v3203_v26 = vld [vmem:[%s3082_s7 + $0x18] sm:$0xf] }
  0x36   : > { %v693_v37 = vshrl.u32 %v3203_v26, 16  ;;  %v696_v38 = vshll.u32 %v3203_v26, 16  ;;  %v2782_v43 = vrot.slane %v3203_v26, 9 }
  0x38   : > { %v695_v48 = vrot.slane %v693_v37, 4  ;;  %v698_v49 = vrot.slane %v696_v38, 5  ;;  %v1288_v37 = vrot.slane %v3206_v28, 5  ;;  %v1291_v28 = vrot.slane %v336_v54, 5 }
  0x3a   : > { %v699_v58 = vor.u32 %v698_v49, %v695_v48  ;;  %v1290_v44 = vrot.slane %v1288_v37, 4  ;;  %v3266_v48 = vld [vmem:[%s3082_s7 + $0x30] sm:$0xf]  ;;  %v3269_v49 = vld [vmem:[%s3082_s7 + $0x34] sm:$0xf] }
  0x3b   : > { %v741_v52 = vshrl.u32 %v3266_v48, 16  ;;  %v744_v53 = vshll.u32 %v3266_v48, 16  ;;  %v750_v54 = vshll.u32 %v3269_v49, 16  ;;  %v1302_v46 = vrot.slane %v3269_v49, 5 }
  0x3c   : > { %v700_v1 = vrot.slane %v699_v58, 4  ;;  %v1292_v26 = vsel %vm3195_vm7, %v1290_v44, %v1291_v28 }
  0x3d   : > { %v752_v62 = vrot.slane %v750_v54, 5 }
  0x3e   : > { %v705_v3 = vsel %vm3186_vm6, %v700_v1, %v704_v50  ;;  %v1289_v50 = vsel %vm3195_vm7, %v2782_v43, %v1288_v37  ;;  %v342_v1 = vld [vmem:[%s3082_s7 + $0x38] sm:$0x1] }
  0x3f   : > { %v1033_v19 = vunpack.c.l.b16 %v705_v3  ;;  %v1389_v56 = vunpack.c.l.b16 %v1289_v50  ;;  %v760_v3 = vshll.u32 %v342_v1, 16 }
  0x41   : > { %v762_v17 = vrot.slane %v760_v3, 5 }
  0x44   : > { %2755 = vmatmul.msk.bf16.gmra.mxu1 %vm467_vm1, %v3176_v4  ;;  %2759 = vmatmul.msk.bf16.gmra.mxu2 %vm467_vm1, %v3179_v5 }
  0x45   : > { %2763 = vmatmul.msk.bf16.gmra.mxu3 %vm467_vm1, %v2937_v6  ;;  %2751 = vmatmul.msk.bf16.gmra.mxu0 %vm467_vm1, %v3183_v7  ;;  %v714_v6 = vrot.slane %v712_v60, 5  ;;  %v743_v60 = vrot.slane %v741_v52, 4  ;;  %v2784_v52 = vrot.slane %v3266_v48, 9  ;;  %v3338_v48 = vld [vmem:[%s3082_s7 + $0x4c] sm:$0xf] }
  0x47   : > { %v715_v10 = vsel %vm3186_vm6, %v710_v2, %v714_v6 }
  0x48   : > { %v1034_v29 = vunpack.c.l.b16 %v715_v10  ;;  %v2783_v10 = vrot.slane %v3234_v42, 9 }
  0x4a   : > { %v3255_v38 = vpack.c.b16 %v1034_v29, %v1033_v19  ;;  %v1296_v18 = vsel %vm3195_vm7, %v2783_v10, %v1295_v0  ;;  %v765_v29 = vshrl.u32 %v3299_v8, 16 }
  0x4b   : > { %v1391_v34 = vunpack.c.l.b16 %v1296_v18 }
  0x54   : > { %2764 = vmatmul.msk.bf16.vlgmr.msrb.gmra.mxu1 %vm467_vm1, %v1061_v55  ;;  %2796 = vmatmul.msk.bf16.vlgmr.msrb.gmra.mxu2 %vm467_vm1, %v1417_v57  ;;  %v754_v55 = vshrl.u32 %v3269_v49, 16  ;;  %v1390_v57 = vunpack.c.l.b16 %v1292_v26  ;;  %v1305_v49 = vrot.slane %v342_v1, 5 }
  0x55   : > { %2816 = vmatmul.msk.bf16.vlgmr.msrb.gmra.mxu3 %vm467_vm1, %v3108_v23  ;;  %2832 = vmatmul.msk.bf16.vlgmr.msrb.gmra.mxu0 %vm467_vm1, %v1062_v61  ;;  %v717_v23 = vshrl.u32 %v3234_v42, 16 }
  0x56   : > { %v756_v63 = vrot.slane %v754_v55, 4  ;;  %v3285_v2 = vpack.c.b16 %v1390_v57, %v1389_v56  ;;  %v3335_v57 = vld [vmem:[%s3082_s7 + $0x48] sm:$0xf] }
  0x57   : > { %v719_v30 = vrot.slane %v717_v23, 4  ;;  %v1297_v23 = vrot.slane %v1295_v0, 4  ;;  %v802_v0 = vshrl.u32 %v3338_v48, 16 }
  0x58   : > { %v757_v9 = vor.u32 %v756_v63, %v752_v62  ;;  %v798_v63 = vshll.u32 %v3338_v48, 16 }
  0x59   : > { %v723_v39 = vor.u32 %v722_v31, %v719_v30  ;;  %v1299_v19 = vsel %vm3195_vm7, %v1297_v23, %v1298_v11  ;;  %v774_v30 = vshll.u32 %v3302_v12, 16  ;;  %v778_v31 = vshrl.u32 %v3302_v12, 16 }
  0x5a   : > { %v758_v42 = vrot.slane %v757_v9, 4  ;;  %v1392_v37 = vunpack.c.l.b16 %v1299_v19  ;;  %v800_v11 = vrot.slane %v798_v63, 5  ;;  %v1309_v19 = vrot.slane %v3302_v12, 5 }
  0x5b   : > { %v724_v45 = vrot.slane %v723_v39, 4  ;;  %v767_v39 = vrot.slane %v765_v29, 4  ;;  %v776_v41 = vrot.slane %v774_v30, 5  ;;  %v780_v43 = vrot.slane %v778_v31, 4 }
  0x5c   : > { %v763_v33 = vsel %vm3186_vm6, %v758_v42, %v762_v17  ;;  %v3320_v47 = vpack.c.b16 %v1392_v37, %v1391_v34  ;;  %v3355_v42 = vld [vmem:[%s4204_s3] ss:$0 sm:$0xff]  ;;  %v3358_v17 = vld [vmem:[%s3082_s7 + $0x50] sm:$0x1]  ;;  %v2785_v12 = vrot.slane %v3299_v8, 9  ;;  %v1311_v37 = vrot.slane %v1309_v19, 4 }
  0x5d   : > { %v1038_v28 = vunpack.c.l.b16 %v763_v33  ;;  %v781_v26 = vor.u32 %v780_v43, %v776_v41 }
  0x5f   : > { %v782_v55 = vrot.slane %v781_v26, 4 }
  0x64   : > { %2765 = vmatmul.msk.bf16.gmra.mxu1 %vm467_vm1, %v1062_v61  ;;  %2797 = vmatmul.msk.bf16.gmra.mxu2 %vm467_vm1, %v3252_v35  ;;  %v746_v61 = vrot.slane %v744_v53, 5  ;;  %v1304_v53 = vrot.slane %v1302_v46, 4 }
  0x65   : > { %2817 = vmatmul.msk.bf16.gmra.mxu3 %vm467_vm1, %v3125_v27  ;;  %2833 = vmatmul.msk.bf16.gmra.mxu0 %vm467_vm1, %v3255_v38  ;;  %v729_v27 = vsel %vm3186_vm6, %v724_v45, %v728_v32  ;;  %v3317_v45 = vld [vmem:[%s3082_s7 + $0x44] sm:$0x1] }
  0x66   : > { %v1035_v58 = vunpack.c.l.b16 %v729_v27  ;;  %v747_v36 = vor.u32 %v746_v61, %v743_v60  ;;  %v784_v27 = vshll.u32 %v3317_v45, 16  ;;  %v789_v61 = vshrl.u32 %v3335_v57, 16 }
  0x68   : > { %v3287_v6 = vpack.c.b16 %v1036_v59, %v1035_v58  ;;  %v748_v16 = vrot.slane %v747_v36, 4  ;;  %v786_v56 = vrot.slane %v784_v27, 5  ;;  %v1303_v58 = vsel %vm3195_vm7, %v2784_v52, %v1302_v46  ;;  %v3385_v46 = vld [vmem:[%s3082_s7 + $0x58] sm:$0xf] }
  0x69   : > { %v1306_v59 = vsel %vm3195_vm7, %v1304_v53, %v1305_v49  ;;  %v1393_v1 = vunpack.c.l.b16 %v1303_v58  ;;  %v791_v10 = vrot.slane %v789_v61, 4  ;;  %v822_v58 = vshll.u32 %v3385_v46, 16 }
  0x6a   : > { %v753_v32 = vsel %vm3186_vm6, %v748_v16, %v752_v62  ;;  %v792_v62 = vshll.u32 %v3335_v57, 16  ;;  %v1394_v36 = vunpack.c.l.b16 %v1306_v59  ;;  %v804_v16 = vrot.slane %v802_v0, 4 }
  0x6b   : > { %v1037_v44 = vunpack.c.l.b16 %v753_v32  ;;  %v808_v32 = vshll.u32 %v3358_v17, 16  ;;  %v826_v59 = vshrl.u32 %v3385_v46, 16 }
  0x6c   : > { %v794_v23 = vrot.slane %v792_v62, 5  ;;  %v3360_v18 = vpack.c.b16 %v1394_v36, %v1393_v1  ;;  %v805_v31 = vor.u32 %v804_v16, %v800_v11  ;;  %v824_v1 = vrot.slane %v822_v58, 5 }
  0x6d   : > { %v3323_v51 = vpack.c.b16 %v1038_v28, %v1037_v44  ;;  %v810_v43 = vrot.slane %v808_v32, 5  ;;  %v3382_v44 = vld [vmem:[%s3082_s7 + $0x54] sm:$0xf]  ;;  %v828_v36 = vrot.slane %v826_v59, 4 }
  0x6e   : > { %4229 = vst [vmem:[#allocation3_spill] sm:$0xff] %v3360_v18  ;;  %v795_v30 = vor.u32 %v794_v23, %v791_v10  ;;  %v813_v49 = vshrl.u32 %v3382_v44, 16  ;;  %v3412_v10 = vld [vmem:[%s3082_s7 + $0x5c] sm:$0x1] }
  0x6f   : > { %4228 = vst [vmem:[#allocation2_spill] sm:$0xff] %v3323_v51 }
  0x70   : > { %v815_v63 = vrot.slane %v813_v49, 4 }
  0x74   : > { %2766 = vmatmul.msk.bf16.gmra.mxu1 %vm467_vm1, %v3255_v38  ;;  %2798 = vmatmul.msk.bf16.gmra.mxu2 %vm467_vm1, %v3285_v2 }
  0x75   : > { %2818 = vmatmul.msk.bf16.gmra.mxu3 %vm467_vm1, %v3183_v7  ;;  %2834 = vmatmul.msk.bf16.gmra.mxu0 %vm467_vm1, %v3287_v6  ;;  %v768_v7 = vshll.u32 %v3299_v8, 16 }
  0x77   : > { %v770_v40 = vrot.slane %v768_v7, 5 }
  0x79   : > { %v771_v50 = vor.u32 %v770_v40, %v767_v39  ;;  %v1312_v39 = vrot.slane %v3317_v45, 5  ;;  %v796_v40 = vrot.slane %v795_v30, 4  ;;  %v1310_v45 = vsel %vm3195_vm7, %v2785_v12, %v1309_v19 }
  0x7a   : > { %v829_v12 = vor.u32 %v828_v36, %v824_v1 }
  0x7b   : > { %v772_v54 = vrot.slane %v771_v50, 4  ;;  %v801_v52 = vsel %vm3186_vm6, %v796_v40, %v800_v11 }
  0x7c   : > { %v1041_v61 = vunpack.c.l.b16 %v801_v52 }
  0x7d   : > { %v777_v60 = vsel %vm3186_vm6, %v772_v54, %v776_v41  ;;  %v806_v41 = vrot.slane %v805_v31, 4 }
  0x7e   : > { %v1039_v9 = vunpack.c.l.b16 %v777_v60  ;;  %v1395_v60 = vunpack.c.l.b16 %v1310_v45 }
  0x7f   : > { %v811_v53 = vsel %vm3186_vm6, %v806_v41, %v810_v43  ;;  %v1319_v41 = vrot.slane %v3358_v17, 5  ;;  %v3437_v43 = vld [vmem:[%s3082_s7 + $0x60] sm:$0xf] }
  0x80   : > { %v1042_v62 = vunpack.c.l.b16 %v811_v53  ;;  %v837_v52 = vshrl.u32 %v3437_v43, 16  ;;  %v840_v49 = vshll.u32 %v3437_v43, 16 }
  0x82   : > { %v3422_v30 = vpack.c.b16 %v1042_v62, %v1041_v61 }
  0x84   : > { %2767 = vmatmul.msk.bf16.gmra.mxu1 %vm467_vm1, %v3287_v6  ;;  %2799 = vmatmul.msk.bf16.gmra.mxu2 %vm467_vm1, %v3320_v47  ;;  %4234 = vst [vmem:[#allocation8_spill] sm:$0xff] %v3422_v30 }
  0x85   : > { %2819 = vmatmul.msk.bf16.gmra.mxu3 %vm467_vm1, %v3085_v13  ;;  %2835 = vmatmul.msk.bf16.gmra.mxu0 %vm467_vm1, %v3323_v51  ;;  %v787_v13 = vsel %vm3186_vm6, %v782_v55, %v786_v56  ;;  %v816_v56 = vshll.u32 %v3382_v44, 16 }
  0x86   : > { %v1040_v3 = vunpack.c.l.b16 %v787_v13 }
  0x87   : > { %v818_v0 = vrot.slane %v816_v56, 5 }
  0x88   : > { %v3363_v7 = vpack.c.b16 %v1040_v3, %v1039_v9  ;;  %v1316_v3 = vrot.slane %v3338_v48, 5 }
  0x89   : > { %v819_v32 = vor.u32 %v818_v0, %v815_v63 }
  0x8a   : > { %4230 = vst [vmem:[#allocation4_spill] sm:$0xff] %v3363_v7  ;;  %v1318_v40 = vrot.slane %v1316_v3, 4 }
  0x91   : > { %v549_v29 = vpop.f32.mrf.mxu1 }
  0x92   : > { %v3367_v33 = vadd.f32 %v3355_v42, %v549_v29  ;;  %v3369_v34 = vpop.f32.mrf.mxu0 }
  0x94   : > { %2768 = vmatmul.msk.bf16.gmra.mxu1 %vm467_vm1, %v3323_v51  ;;  %2800 = vmatmul.msk.bf16.gmra.mxu2 %vm467_vm1, %v3360_v18 }
  0x95   : > { %2820 = vmatmul.msk.bf16.gmra.mxu3 %vm467_vm1, %v3101_v20  ;;  %2836 = vmatmul.msk.bf16.gmra.mxu0 %vm467_vm1, %v3363_v7  ;;  %v1313_v20 = vsel %vm3195_vm7, %v1311_v37, %v1312_v39  ;;  %v832_v37 = vshll.u32 %v3412_v10, 16  ;;  %v2786_v39 = vrot.slane %v3335_v57, 9  ;;  %v820_v57 = vrot.slane %v819_v32, 4 }
  0x96   : > { %v1396_v13 = vunpack.c.l.b16 %v1313_v20 }
  0x97   : > { %v569_v28 = vpop.f32.mrf.mxu2  ;;  %v834_v45 = vrot.slane %v832_v37, 5  ;;  %v1317_v20 = vsel %vm3195_vm7, %v2786_v39, %v1316_v3  ;;  %v825_v62 = vsel %vm3186_vm6, %v820_v57, %v824_v1  ;;  %v842_v3 = vrot.slane %v840_v49, 5  ;;  %v3470_v37 = vld [vmem:[%s3082_s7 + $0x68] sm:$0x1] }
  0x98   : > { %v3388_v50 = vadd.f32 %v3355_v42, %v569_v28  ;;  %v589_v8 = vpop.f32.mrf.mxu3  ;;  %v3417_v16 = vpack.c.b16 %v1396_v13, %v1395_v60  ;;  %v3444_v28 = vld [vmem:[%s3082_s7 + $0x64] sm:$0xf]  ;;  %v1397_v0 = vunpack.c.l.b16 %v1317_v20  ;;  %v1043_v32 = vunpack.c.l.b16 %v825_v62 }
  0x99   : > { %v3395_v26 = vadd.f32 %v3355_v42, %v589_v8  ;;  %v551_v27 = vpop.f32.mrf.mxu1  ;;  %v830_v8 = vrot.slane %v829_v12, 4  ;;  %v846_v56 = vshll.u32 %v3444_v28, 16  ;;  %v850_v58 = vshrl.u32 %v3444_v28, 16 }
  0x9a   : > { %v3403_v54 = vadd.f32 %v3355_v42, %v551_v27  ;;  %v3405_v55 = vpop.f32.mrf.mxu0  ;;  %4232 = vst [vmem:[#allocation6_spill] sm:$0xff] %v3417_v16  ;;  %v1320_v27 = vsel %vm3195_vm7, %v1318_v40, %v1319_v41  ;;  %v1323_v41 = vrot.slane %v3385_v46, 5  ;;  %v2787_v49 = vrot.slane %v3382_v44, 9  ;;  %v3503_v44 = vld [vmem:[%s3082_s7 + $0x70] sm:$0xf] }
  0x9b   : > { %4231 = vst [vmem:[#allocation5_spill] sm:$0xff] %v3395_v26  ;;  %v835_v63 = vsel %vm3186_vm6, %v830_v8, %v834_v45  ;;  %v1398_v36 = vunpack.c.l.b16 %v1320_v27  ;;  %v609_v26 = vadd.f32 %v3355_v42, %v3369_v34 }
  0x9c   : > { %v1044_v12 = vunpack.c.l.b16 %v835_v63 }
  0x9d   : > { %v3472_v40 = vpack.c.b16 %v1398_v36, %v1397_v0  ;;  %v3500_v0 = vld [vmem:[%s3082_s7 + $0x6c] sm:$0xf]  ;;  %v1324_v36 = vsel %vm3195_vm7, %v2787_v49, %v1323_v41 }
  0x9f   : > { %v571_v9 = vpop.f32.mrf.mxu2  ;;  %4236 = vst [vmem:[#allocation10_spill] sm:$0xff] %v3472_v40 }
  0xa0   : > { %v3415_v23 = vadd.f32 %v3355_v42, %v571_v9  ;;  %v591_v11 = vpop.f32.mrf.mxu3  ;;  %v839_v9 = vrot.slane %v837_v52, 4  ;;  %v3482_v52 = vpack.c.b16 %v1044_v12, %v1043_v32  ;;  %v861_v12 = vshrl.u32 %v3500_v0, 16 }
  0xa1   : > { %v3420_v19 = vadd.f32 %v3355_v42, %v591_v11  ;;  %v554_v29 = vpop.f32.mrf.mxu1  ;;  %v848_v11 = vrot.slane %v846_v56, 5  ;;  %v1325_v56 = vrot.slane %v1323_v41, 4 }
  0xa2   : > { %v3425_v31 = vadd.f32 %v3355_v42, %v554_v29  ;;  %v3427_v48 = vpop.f32.mrf.mxu0  ;;  %v852_v29 = vrot.slane %v850_v58, 4  ;;  %v843_v8 = vor.u32 %v842_v3, %v839_v9  ;;  %4238 = vst [vmem:[#allocation12_spill] sm:$0xff] %v3482_v52  ;;  %v1326_v58 = vrot.slane %v3412_v10, 5 }
  0xa3   : > { %4233 = vst [vmem:[#allocation7_spill] sm:$0xff] %v3420_v19 }
  0xa4   : > { %2769 = vmatmul.msk.bf16.gmra.mxu1 %vm467_vm1, %v3363_v7  ;;  %2801 = vmatmul.msk.bf16.gmra.mxu2 %vm467_vm1, %v3417_v16  ;;  %v853_v45 = vor.u32 %v852_v29, %v848_v11  ;;  %v1327_v9 = vsel %vm3195_vm7, %v1325_v56, %v1326_v58 }
  0xa5   : > { %2821 = vmatmul.msk.bf16.gmra.mxu3 %vm467_vm1, %v3118_v24  ;;  %2837 = vmatmul.msk.bf16.gmra.mxu0 %vm467_vm1, %v3422_v30  ;;  %v1400_v49 = vunpack.c.l.b16 %v1327_v9 }
  0xa6   : > { %v854_v62 = vrot.slane %v853_v45, 4  ;;  %v874_v45 = vshrl.u32 %v3503_v44, 16 }
  0xa7   : > { %v574_v17 = vpop.f32.mrf.mxu2 }
  0xa8   : > { %v3452_v53 = vadd.f32 %v3355_v42, %v574_v17  ;;  %v594_v24 = vpop.f32.mrf.mxu3  ;;  %v856_v17 = vshll.u32 %v3470_v37, 16 }
  0xa9   : > { %v3458_v59 = vadd.f32 %v3355_v42, %v594_v24  ;;  %v556_v60 = vpop.f32.mrf.mxu1 }
  0xaa   : > { %v3461_v13 = vadd.f32 %v3355_v42, %v556_v60  ;;  %v3463_v61 = vpop.f32.mrf.mxu0  ;;  %v844_v60 = vrot.slane %v843_v8, 4  ;;  %v858_v63 = vrot.slane %v856_v17, 5  ;;  %v870_v8 = vshll.u32 %v3503_v44, 16 }
  0xab   : > { %4235 = vst [vmem:[#allocation9_spill] sm:$0xff] %v3458_v59 }
  0xac   : > { %v859_v32 = vsel %vm3186_vm6, %v854_v62, %v858_v63  ;;  %v872_v63 = vrot.slane %v870_v8, 5 }
  0xad   : > { %v1046_v58 = vunpack.c.l.b16 %v859_v32 }
  0xaf   : > { %v576_v39 = vpop.f32.mrf.mxu2 }
  0xb0   : > { %v3476_v1 = vadd.f32 %v3355_v42, %v576_v39  ;;  %v596_v57 = vpop.f32.mrf.mxu3 }
  0xb1   : > { %v3480_v20 = vadd.f32 %v3355_v42, %v596_v57  ;;  %v559_v27 = vpop.f32.mrf.mxu1  ;;  %v864_v57 = vshll.u32 %v3500_v0, 16 }
  0xb2   : > { %v3485_v24 = vadd.f32 %v3355_v42, %v559_v27  ;;  %v3487_v46 = vpop.f32.mrf.mxu0  ;;  %v1399_v27 = vunpack.c.l.b16 %v1324_v36  ;;  %v1330_v36 = vrot.slane %v3444_v28, 5  ;;  %v1333_v28 = vrot.slane %v3470_v37, 5 }
  0xb3   : > { %4237 = vst [vmem:[#allocation11_spill] sm:$0xff] %v3480_v20  ;;  %v866_v62 = vrot.slane %v864_v57, 5 }
  0xb4   : > { %2770 = vmatmul.msk.bf16.gmra.mxu1 %vm467_vm1, %v3422_v30  ;;  %2802 = vmatmul.msk.bf16.gmra.mxu2 %vm467_vm1, %v3472_v40  ;;  %v3534_v19 = vpack.c.b16 %v1400_v49, %v1399_v27  ;;  %v3589_v30 = vld [vmem:[%s3082_s7 + $0x80] sm:$0x1] }
  0xb5   : > { %2822 = vmatmul.msk.bf16.gmra.mxu3 %vm467_vm1, %v3176_v4  ;;  %2838 = vmatmul.msk.bf16.gmra.mxu0 %vm467_vm1, %v3482_v52  ;;  %v849_v4 = vsel %vm3186_vm6, %v844_v60, %v848_v11  ;;  %v863_v60 = vrot.slane %v861_v12, 4  ;;  %v904_v34 = vshll.u32 %v3589_v30, 16 }
  0xb6   : > { %v1045_v56 = vunpack.c.l.b16 %v849_v4  ;;  %4242 = vst [vmem:[#allocation16_spill] sm:$0xff] %v3534_v19 }
  0xb7   : > { %v579_v10 = vpop.f32.mrf.mxu2  ;;  %v867_v32 = vor.u32 %v866_v62, %v863_v60  ;;  %v3562_v62 = vld [vmem:[%s3082_s7 + $0x7c] sm:$0xf] }
  0xb8   : > { %v3510_v3 = vadd.f32 %v3355_v42, %v579_v10  ;;  %v599_v29 = vpop.f32.mrf.mxu3  ;;  %v876_v10 = vrot.slane %v874_v45, 4  ;;  %v1332_v45 = vrot.slane %v1330_v36, 4 }
  0xb9   : > { %v3518_v39 = vadd.f32 %v3355_v42, %v599_v29  ;;  %v561_v41 = vpop.f32.mrf.mxu1  ;;  %v3529_v29 = vld [vmem:[%s3082_s7 + $0x74] sm:$0x1]  ;;  %v868_v27 = vrot.slane %v867_v32, 4 }
  0xba   : > { %4239 = vst [vmem:[#allocation13_spill] sm:$0xff] %v3510_v3  ;;  %v3524_v17 = vadd.f32 %v3355_v42, %v561_v41  ;;  %v3526_v11 = vpop.f32.mrf.mxu0  ;;  %v3536_v41 = vpack.c.b16 %v1046_v58, %v1045_v56  ;;  %v877_v12 = vor.u32 %v876_v10, %v872_v63  ;;  %v880_v57 = vshll.u32 %v3529_v29, 16  ;;  %v3559_v58 = vld [vmem:[%s3082_s7 + $0x78] sm:$0xf]  ;;  %v3637_v3 = vld [vmem:[%s3082_s7 + $0x8c] sm:$0x1] }
  0xbb   : > { %4240 = vst [vmem:[#allocation14_spill] sm:$0xff] %v3518_v39  ;;  %v1340_v7 = vrot.slane %v3529_v29, 5  ;;  %v610_v29 = vadd.f32 %v3355_v42, %v3405_v55 }
  0xbc   : > { %4243 = vst [vmem:[#allocation17_spill] sm:$0xff] %v3536_v41  ;;  %v878_v49 = vrot.slane %v877_v12, 4  ;;  %v882_v56 = vrot.slane %v880_v57, 5  ;;  %v873_v12 = vsel %vm3186_vm6, %v868_v27, %v872_v63 }
  0xbd   : > { %v1047_v63 = vunpack.c.l.b16 %v873_v12 }
  0xbe   : > { %v883_v57 = vsel %vm3186_vm6, %v878_v49, %v882_v56 }
  0xbf   : > { %v581_v39 = vpop.f32.mrf.mxu2  ;;  %v1048_v27 = vunpack.c.l.b16 %v883_v57 }
  0xc0   : > { %v3532_v20 = vadd.f32 %v3355_v42, %v581_v39  ;;  %v601_v59 = vpop.f32.mrf.mxu3 }
  0xc1   : > { %v3540_v9 = vadd.f32 %v3355_v42, %v601_v59  ;;  %v564_v4 = vpop.f32.mrf.mxu1  ;;  %v2788_v59 = vrot.slane %v3437_v43, 9 }
  0xc2   : > { %4241 = vst [vmem:[#allocation15_spill] sm:$0xff] %v3532_v20  ;;  %v3544_v39 = vadd.f32 %v3355_v42, %v564_v4  ;;  %v3546_v8 = vpop.f32.mrf.mxu0 }
  0xc3   : > { %4244 = vst [vmem:[#allocation18_spill] sm:$0xff] %v3540_v9  ;;  %v1331_v43 = vsel %vm3195_vm7, %v2788_v59, %v1330_v36  ;;  %v894_v59 = vshll.u32 %v3562_v62, 16 }
  0xc4   : > { %2771 = vmatmul.msk.bf16.gmra.mxu1 %vm467_vm1, %v3482_v52  ;;  %2803 = vmatmul.msk.bf16.gmra.mxu2 %vm467_vm1, %v3534_v19 }
  0xc5   : > { %2823 = vmatmul.msk.bf16.gmra.mxu3 %vm467_vm1, %v3088_v14  ;;  %2839 = vmatmul.msk.bf16.gmra.mxu0 %vm467_vm1, %v3536_v41  ;;  %v1334_v14 = vsel %vm3195_vm7, %v1332_v45, %v1333_v28  ;;  %v888_v28 = vshll.u32 %v3559_v58, 16  ;;  %v898_v45 = vshrl.u32 %v3562_v62, 16  ;;  %v896_v56 = vrot.slane %v894_v59, 5 }
  0xc7   : > { %v584_v60 = vpop.f32.mrf.mxu2  ;;  %v890_v49 = vrot.slane %v888_v28, 5  ;;  %v900_v52 = vrot.slane %v898_v45, 4 }
  0xc8   : > { %v3565_v10 = vadd.f32 %v3355_v42, %v584_v60  ;;  %v604_v37 = vpop.f32.mrf.mxu3  ;;  %v885_v60 = vshrl.u32 %v3559_v58, 16 }
  0xc9   : > { %v3572_v4 = vadd.f32 %v3355_v42, %v604_v37  ;;  %v566_v32 = vpop.f32.mrf.mxu1  ;;  %v1401_v37 = vunpack.c.l.b16 %v1331_v43  ;;  %v901_v45 = vor.u32 %v900_v52, %v896_v56 }
  0xca   : > { %4245 = vst [vmem:[#allocation19_spill] sm:$0xff] %v3565_v10  ;;  %v3580_v9 = vadd.f32 %v3355_v42, %v566_v32  ;;  %v3582_v36 = vpop.f32.mrf.mxu0  ;;  %v887_v19 = vrot.slane %v885_v60, 4  ;;  %v1337_v32 = vrot.slane %v3503_v44, 5  ;;  %v3601_v60 = vpack.c.b16 %v1048_v27, %v1047_v63 }
  0xcb   : > { %4246 = vst [vmem:[#allocation20_spill] sm:$0xff] %v3572_v4  ;;  %v1402_v4 = vunpack.c.l.b16 %v1334_v14  ;;  %v902_v52 = vrot.slane %v901_v45, 4 }
  0xcc   : > { %v891_v59 = vor.u32 %v890_v49, %v887_v19 }
  0xcd   : > { %v3596_v14 = vpack.c.b16 %v1402_v4, %v1401_v37  ;;  %v3611_v4 = vld [vmem:[%s3082_s7 + $0x84] sm:$0xf] }
  0xce   : > { %v892_v19 = vrot.slane %v891_v59, 4 }
  0xcf   : > { %v586_v40 = vpop.f32.mrf.mxu2  ;;  %4248 = vst [vmem:[#allocation22_spill] sm:$0xff] %v3596_v14 }
  0xd0   : > { %v3594_v16 = vadd.f32 %v3355_v42, %v586_v40  ;;  %v606_v43 = vpop.f32.mrf.mxu3  ;;  %v2789_v40 = vrot.slane %v3500_v0, 9  ;;  %v906_v0 = vrot.slane %v904_v34, 5 }
  0xd1   : > { %v3599_v12 = vadd.f32 %v3355_v42, %v606_v43  ;;  %v1141_v57 = vpop.f32.mrf.mxu1 }
  0xd2   : > { %4247 = vst [vmem:[#allocation21_spill] sm:$0xff] %v3594_v16  ;;  %v1221_v44 = vadd.f32 %v1141_v57, %v609_v26  ;;  %v1785_v28 = vpop.f32.mrf.mxu0  ;;  %v1339_v16 = vrot.slane %v1337_v32, 4  ;;  %v3618_v26 = vld [vmem:[%s3082_s7 + $0x88] sm:$0xf]  ;;  %v1338_v63 = vsel %vm3195_vm7, %v2789_v40, %v1337_v32  ;;  %v912_v57 = vshll.u32 %v3611_v4, 16 }
  0xd3   : > { %4249 = vst [vmem:[#allocation23_spill] sm:$0xff] %v3599_v12  ;;  %v918_v59 = vshll.u32 %v3618_v26, 16  ;;  %v922_v45 = vshrl.u32 %v3618_v26, 16  ;;  %v897_v32 = vsel %vm3186_vm6, %v892_v19, %v896_v56  ;;  %v1344_v19 = vrot.slane %v3562_v62, 5 }
  0xd4   : > { %2772 = vmatmul.msk.bf16.gmra.mxu1 %vm467_vm1, %v3536_v41  ;;  %2804 = vmatmul.msk.bf16.gmra.mxu2 %vm467_vm1, %v3596_v14  ;;  %v1341_v27 = vsel %vm3195_vm7, %v1339_v16, %v1340_v7  ;;  %v907_v7 = vsel %vm3186_vm6, %v902_v52, %v906_v0  ;;  %v1403_v16 = vunpack.c.l.b16 %v1338_v63  ;;  %v1049_v18 = vunpack.c.l.b16 %v897_v32 }
  0xd5   : > { %2824 = vmatmul.msk.bf16.gmra.mxu3 %vm467_vm1, %v3104_v21  ;;  %2840 = vmatmul.msk.bf16.gmra.mxu0 %vm467_vm1, %v3601_v60  ;;  %v909_v21 = vshrl.u32 %v3611_v4, 16  ;;  %v920_v41 = vrot.slane %v918_v59, 5  ;;  %v924_v10 = vrot.slane %v922_v45, 4  ;;  %v1050_v51 = vunpack.c.l.b16 %v907_v7 }
  0xd7   : > { %v1493_v37 = vpop.f32.mrf.mxu2  ;;  %v911_v40 = vrot.slane %v909_v21, 4  ;;  %v928_v21 = vshll.u32 %v3637_v3, 16 }
  0xd8   : > { %v1573_v49 = vadd.f32 %v1493_v37, %v1221_v44  ;;  %v1630_v43 = vpop.f32.mrf.mxu3  ;;  %v1404_v44 = vunpack.c.l.b16 %v1341_v27  ;;  %v914_v37 = vrot.slane %v912_v57, 5  ;;  %v925_v27 = vor.u32 %v924_v10, %v920_v41 }
  0xd9   : > { %v1143_v34 = vpop.f32.mrf.mxu1 }
  0xda   : > { %v1710_v55 = vadd.f32 %v1630_v43, %v1573_v49  ;;  %v1222_v12 = vadd.f32 %v1143_v34, %v610_v29  ;;  %v1787_v14 = vpop.f32.mrf.mxu0  ;;  %v611_v29 = vadd.f32 %v3355_v42, %v3427_v48  ;;  %v3641_v56 = vpack.c.b16 %v1404_v44, %v1403_v16 }
  0xdb   : > { %v915_v63 = vor.u32 %v914_v37, %v911_v40  ;;  %v3645_v43 = vpack.c.b16 %v1050_v51, %v1049_v18  ;;  %v2790_v48 = vrot.slane %v3559_v58, 9  ;;  %v1346_v34 = vrot.slane %v1344_v19, 4  ;;  %v3660_v18 = vld [vmem:[%s3082_s7 + $0x90] sm:$0xf] }
  0xdc   : > { %v3634_v20 = vadd.f32 %v1785_v28, %v1710_v55  ;;  %v1347_v55 = vrot.slane %v3589_v30, 5  ;;  %v926_v10 = vrot.slane %v925_v27, 4  ;;  %v3663_v30 = vld [vmem:[%s3082_s7 + $0x94] sm:$0xf]  ;;  %v612_v58 = vadd.f32 %v3355_v42, %v3463_v61 }
  0xdd   : > { %v916_v62 = vrot.slane %v915_v63, 4  ;;  %v1345_v7 = vsel %vm3195_vm7, %v2790_v48, %v1344_v19  ;;  %v936_v61 = vshll.u32 %v3660_v18, 16  ;;  %v946_v19 = vshrl.u32 %v3663_v30, 16 }
  0xde   : > { %v1348_v44 = vsel %vm3195_vm7, %v1346_v34, %v1347_v55  ;;  %v1405_v27 = vunpack.c.l.b16 %v1345_v7  ;;  %v1351_v7 = vrot.slane %v3618_v26, 5 }
  0xdf   : > { %v1495_v49 = vpop.f32.mrf.mxu2  ;;  %v938_v48 = vrot.slane %v936_v61, 5  ;;  %v948_v55 = vrot.slane %v946_v19, 4 }
  0xe0   : > { %v1574_v52 = vadd.f32 %v1495_v49, %v1222_v12  ;;  %v1632_v0 = vpop.f32.mrf.mxu3  ;;  %v930_v12 = vrot.slane %v928_v21, 5  ;;  %v942_v49 = vshll.u32 %v3663_v30, 16  ;;  %v1406_v21 = vunpack.c.l.b16 %v1348_v44 }
  0xe1   : > { %v1146_v28 = vpop.f32.mrf.mxu1  ;;  %v1353_v26 = vrot.slane %v1351_v7, 4 }
  0xe2   : > { %v1711_v57 = vadd.f32 %v1632_v0, %v1574_v52  ;;  %v1223_v59 = vadd.f32 %v1146_v28, %v611_v29  ;;  %v1790_v45 = vpop.f32.mrf.mxu0  ;;  %v931_v40 = vsel %vm3186_vm6, %v926_v10, %v930_v12  ;;  %v933_v29 = vshrl.u32 %v3660_v18, 16 }
  0xe3   : > { %v944_v34 = vrot.slane %v942_v49, 5  ;;  %v613_v12 = vadd.f32 %v3355_v42, %v3487_v46  ;;  %v2791_v46 = vrot.slane %v3611_v4, 9  ;;  %v1354_v49 = vrot.slane %v3637_v3, 5 }
  0xe4   : > { %2773 = vmatmul.msk.bf16.gmra.mxu1 %vm467_vm1, %v3601_v60  ;;  %2805 = vmatmul.msk.bf16.gmra.mxu2 %vm467_vm1, %v3641_v56  ;;  %v3653_v51 = vadd.f32 %v1787_v14, %v1711_v57  ;;  %v614_v4 = vadd.f32 %v3355_v42, %v3526_v11 }
  0xe5   : > { %2825 = vmatmul.msk.bf16.gmra.mxu3 %vm467_vm1, %v3121_v25  ;;  %2841 = vmatmul.msk.bf16.gmra.mxu0 %vm467_vm1, %v3645_v43  ;;  %v921_v25 = vsel %vm3186_vm6, %v916_v62, %v920_v41  ;;  %v1052_v41 = vunpack.c.l.b16 %v931_v40  ;;  %v3682_v62 = vld [vmem:[%s3082_s7 + $0x98] sm:$0x1] }
  0xe6   : > { %v1051_v28 = vunpack.c.l.b16 %v921_v25  ;;  %v949_v25 = vor.u32 %v948_v55, %v944_v34  ;;  %v952_v40 = vshll.u32 %v3682_v62, 16 }
  0xe7   : > { %v1498_v32 = vpop.f32.mrf.mxu2 }
  0xe8   : > { %v1575_v16 = vadd.f32 %v1498_v32, %v1223_v59  ;;  %v1635_v14 = vpop.f32.mrf.mxu3  ;;  %v935_v59 = vrot.slane %v933_v29, 4  ;;  %v3689_v44 = vpack.c.b16 %v1052_v41, %v1051_v28  ;;  %v3708_v41 = vld [vmem:[%s3082_s7 + $0xa0] sm:$0xf] }
  0xe9   : > { %v1148_v37 = vpop.f32.mrf.mxu1 }
  0xea   : > { %v1712_v52 = vadd.f32 %v1635_v14, %v1575_v16  ;;  %v1224_v0 = vadd.f32 %v1148_v37, %v612_v58  ;;  %v1792_v63 = vpop.f32.mrf.mxu0  ;;  %v3686_v58 = vpack.c.b16 %v1406_v21, %v1405_v27  ;;  %v954_v27 = vrot.slane %v952_v40, 5  ;;  %v3705_v21 = vld [vmem:[%s3082_s7 + $0x9c] sm:$0xf] }
  0xec   : > { %v3679_v57 = vadd.f32 %v1790_v45, %v1712_v52  ;;  %v939_v45 = vor.u32 %v938_v48, %v935_v59  ;;  %v1352_v59 = vsel %vm3195_vm7, %v2791_v46, %v1351_v7  ;;  %v966_v7 = vshll.u32 %v3708_v41, 16 }
  0xee   : > { %v940_v52 = vrot.slane %v939_v45, 4  ;;  %v970_v45 = vshrl.u32 %v3708_v41, 16 }
  0xef   : > { %v1500_v10 = vpop.f32.mrf.mxu2 }
  0xf0   : > { %v1576_v32 = vadd.f32 %v1500_v10, %v1224_v0  ;;  %v1637_v16 = vpop.f32.mrf.mxu3  ;;  %v950_v0 = vrot.slane %v949_v25, 4  ;;  %v945_v55 = vsel %vm3186_vm6, %v940_v52, %v944_v34  ;;  %v1407_v25 = vunpack.c.l.b16 %v1352_v59 }
  0xf1   : > { %v1151_v14 = vpop.f32.mrf.mxu1  ;;  %v1053_v34 = vunpack.c.l.b16 %v945_v55  ;;  %v972_v52 = vrot.slane %v970_v45, 4 }
  0xf2   : > { %v1713_v37 = vadd.f32 %v1637_v16, %v1576_v32  ;;  %v1225_v29 = vadd.f32 %v1151_v14, %v613_v12  ;;  %v1795_v61 = vpop.f32.mrf.mxu0  ;;  %v955_v10 = vsel %vm3186_vm6, %v950_v0, %v954_v27  ;;  %v957_v12 = vshrl.u32 %v3705_v21, 16 }
  0xf3   : > { %v960_v32 = vshll.u32 %v3705_v21, 16  ;;  %v1358_v27 = vrot.slane %v3663_v30, 5 }
  0xf4   : > { %2774 = vmatmul.msk.bf16.gmra.mxu1 %vm467_vm1, %v3645_v43  ;;  %2806 = vmatmul.msk.bf16.gmra.mxu2 %vm467_vm1, %v3686_v58  ;;  %v3698_v19 = vadd.f32 %v1792_v63, %v1713_v37  ;;  %v959_v46 = vrot.slane %v957_v12, 4 }
  0xf5   : > { %2826 = vmatmul.msk.bf16.gmra.mxu3 %vm467_vm1, %v3179_v5  ;;  %2842 = vmatmul.msk.bf16.gmra.mxu0 %vm467_vm1, %v3689_v44  ;;  %v1355_v5 = vsel %vm3195_vm7, %v1353_v26, %v1354_v49  ;;  %v962_v26 = vrot.slane %v960_v32, 5  ;;  %v968_v49 = vrot.slane %v966_v7, 5  ;;  %v3744_v7 = vld [vmem:[%s3082_s7 + $0xa8] sm:$0xf] }
  0xf6   : > { %4250 = vst [vmem:[#allocation24_spill] sm:$0xff] %v3698_v19  ;;  %v1408_v40 = vunpack.c.l.b16 %v1355_v5  ;;  %v3775_v19 = vld [vmem:[%s3082_s7 + $0xb0] sm:$0x1] }
  0xf7   : > { %v1503_v28 = vpop.f32.mrf.mxu2  ;;  %v973_v30 = vor.u32 %v972_v52, %v968_v49  ;;  %v981_v52 = vshrl.u32 %v3744_v7, 16 }
  0xf8   : > { %v1577_v3 = vadd.f32 %v1503_v28, %v1225_v29  ;;  %v1640_v63 = vpop.f32.mrf.mxu3  ;;  %v1054_v29 = vunpack.c.l.b16 %v955_v10  ;;  %v3728_v28 = vld [vmem:[%s3082_s7 + $0xa4] sm:$0x1]  ;;  %v3732_v59 = vpack.c.b16 %v1408_v40, %v1407_v25  ;;  %v3749_v25 = vld [vmem:[%s3082_s7 + $0x90] sm:$0xff] }
  0xf9   : > { %v1153_v48 = vpop.f32.mrf.mxu1  ;;  %v976_v32 = vshll.u32 %v3728_v28, 16  ;;  %4253 = vst [vmem:[#allocation27_spill] sm:$0xff] %v3749_v25  ;;  %v974_v40 = vrot.slane %v973_v30, 4 }
  0xfa   : > { %v1714_v11 = vadd.f32 %v1640_v63, %v1577_v3  ;;  %v1226_v16 = vadd.f32 %v1153_v48, %v614_v4  ;;  %v1797_v14 = vpop.f32.mrf.mxu0  ;;  %v615_v4 = vadd.f32 %v3355_v42, %v3546_v8  ;;  %v3734_v5 = vpack.c.b16 %v1054_v29, %v1053_v34 }
  0xfb   : > { %v963_v48 = vor.u32 %v962_v26, %v959_v46  ;;  %v1360_v8 = vrot.slane %v1358_v27, 4  ;;  %v978_v34 = vrot.slane %v976_v32, 5  ;;  %v616_v29 = vadd.f32 %v3355_v42, %v3582_v36 }
  0xfc   : > { %v3724_v37 = vadd.f32 %v1795_v61, %v1714_v11  ;;  %v2792_v11 = vrot.slane %v3660_v18, 9  ;;  %v3756_v18 = vld [vmem:[%s3082_s7 + $0xac] sm:$0xf] }
  0xfd   : > { %v979_v30 = vsel %vm3186_vm6, %v974_v40, %v978_v34 }
  0xfe   : > { %4251 = vst [vmem:[#allocation25_spill] sm:$0xff] %v3724_v37 }
  0xff   : > { %v1505_v0 = vpop.f32.mrf.mxu2 }
 0x100   : > { %v1578_v3 = vadd.f32 %v1505_v0, %v1226_v16  ;;  %v1642_v63 = vpop.f32.mrf.mxu3  ;;  %v1361_v16 = vrot.slane %v3682_v62, 5  ;;  %v964_v62 = vrot.slane %v963_v48, 4 }
 0x101   : > { %v1156_v61 = vpop.f32.mrf.mxu1 }
 0x102   : > { %v1715_v55 = vadd.f32 %v1642_v63, %v1578_v3  ;;  %v1227_v10 = vadd.f32 %v1156_v61, %v615_v4  ;;  %v1800_v12 = vpop.f32.mrf.mxu0  ;;  %v1362_v26 = vsel %vm3195_vm7, %v1360_v8, %v1361_v16  ;;  %v984_v3 = vshll.u32 %v3744_v7, 16 }
 0x103   : > { %v990_v63 = vshll.u32 %v3756_v18, 16  ;;  %v994_v61 = vshrl.u32 %v3756_v18, 16 }
 0x104   : > { %2775 = vmatmul.msk.bf16.gmra.mxu1 %vm467_vm1, %v3689_v44  ;;  %2807 = vmatmul.msk.bf16.gmra.mxu2 %vm467_vm1, %v3732_v59  ;;  %v3746_v45 = vadd.f32 %v1797_v14, %v1715_v55  ;;  %v1359_v14 = vsel %vm3195_vm7, %v2792_v11, %v1358_v27  ;;  %v969_v27 = vsel %vm3186_vm6, %v964_v62, %v968_v49  ;;  %v983_v11 = vrot.slane %v981_v52, 4 }
 0x105   : > { %2827 = vmatmul.msk.bf16.gmra.mxu3 %vm467_vm1, %v3749_v25  ;;  %2843 = vmatmul.msk.bf16.gmra.mxu0 %vm467_vm1, %v3734_v5  ;;  %v1409_v32 = vunpack.c.l.b16 %v1359_v14  ;;  %v986_v8 = vrot.slane %v984_v3, 5  ;;  %v992_v16 = vrot.slane %v990_v63, 5  ;;  %v1055_v37 = vunpack.c.l.b16 %v969_v27  ;;  %v3793_v27 = vld [vmem:[%s3082_s7 + $0x9c] sm:$0xff] }
 0x106   : > { %4252 = vst [vmem:[#allocation26_spill] sm:$0xff] %v3746_v45  ;;  %v1056_v25 = vunpack.c.l.b16 %v979_v30  ;;  %v1365_v49 = vrot.slane %v3708_v41, 5  ;;  %v1000_v14 = vshll.u32 %v3775_v19, 16  ;;  %v1368_v41 = vrot.slane %v3728_v28, 5 }
 0x107   : > { %v1508_v46 = vpop.f32.mrf.mxu2  ;;  %v987_v40 = vor.u32 %v986_v8, %v983_v11 }
 0x108   : > { %v1579_v0 = vadd.f32 %v1508_v46, %v1227_v10  ;;  %v1645_v4 = vpop.f32.mrf.mxu3  ;;  %v1410_v10 = vunpack.c.l.b16 %v1362_v26  ;;  %v996_v46 = vrot.slane %v994_v61, 4  ;;  %v3781_v52 = vpack.c.b16 %v1056_v25, %v1055_v37 }
 0x109   : > { %v1158_v48 = vpop.f32.mrf.mxu1  ;;  %v2793_v61 = vrot.slane %v3705_v21, 9  ;;  %v1002_v25 = vrot.slane %v1000_v14, 5  ;;  %v3803_v21 = vld [vmem:[%s3082_s7 + $0xb8] sm:$0xf] }
 0x10a   : > { %v1716_v42 = vadd.f32 %v1645_v4, %v1579_v0  ;;  %v1228_v36 = vadd.f32 %v1158_v48, %v616_v29  ;;  %v1802_v55 = vpop.f32.mrf.mxu0  ;;  %v3777_v0 = vpack.c.b16 %v1410_v10, %v1409_v32  ;;  %v997_v34 = vor.u32 %v996_v46, %v992_v16 }
 0x10b   : > { %v1367_v48 = vrot.slane %v1365_v49, 4  ;;  %v1366_v30 = vsel %vm3195_vm7, %v2793_v61, %v1365_v49  ;;  %v1018_v49 = vshrl.u32 %v3803_v21, 16 }
 0x10c   : > { %v3772_v45 = vadd.f32 %v1800_v12, %v1716_v42  ;;  %v988_v42 = vrot.slane %v987_v40, 4  ;;  %v998_v37 = vrot.slane %v997_v34, 4 }
 0x10e   : > { %4254 = vst [vmem:[#allocation28_spill] sm:$0xff] %v3772_v45  ;;  %v993_v11 = vsel %vm3186_vm6, %v988_v42, %v992_v16  ;;  %v1003_v8 = vsel %vm3186_vm6, %v998_v37, %v1002_v25  ;;  %v1020_v37 = vrot.slane %v1018_v49, 4  ;;  %v3821_v25 = vld [vmem:[%s3082_s7 + $0xbc] sm:$0x1] }
 0x10f   : > { %v1510_v29 = vpop.f32.mrf.mxu2 }
 0x110   : > { %v1580_v62 = vadd.f32 %v1510_v29, %v1228_v36  ;;  %v1647_v4 = vpop.f32.mrf.mxu3 }
 0x111   : > { %v1161_v26 = vpop.f32.mrf.mxu1 }
 0x112   : > { %v1717_v12 = vadd.f32 %v1647_v4, %v1580_v62  ;;  %v1229_v3 = vadd.f32 %v1161_v26, %v3367_v33  ;;  %v1805_v63 = vpop.f32.mrf.mxu0  ;;  %v3800_v33 = vld [vmem:[%s3082_s7 + $0xb4] sm:$0xf]  ;;  %v1014_v4 = vshll.u32 %v3803_v21, 16  ;;  %v1411_v26 = vunpack.c.l.b16 %v1366_v30 }
 0x113   : > { %v1005_v29 = vshrl.u32 %v3800_v33, 16  ;;  %v1008_v62 = vshll.u32 %v3800_v33, 16 }
 0x114   : > { %2776 = vmatmul.msk.bf16.gmra.mxu1 %vm467_vm1, %v3734_v5  ;;  %2808 = vmatmul.msk.bf16.gmra.mxu2 %vm467_vm1, %v3777_v0  ;;  %v3790_v36 = vadd.f32 %v1802_v55, %v1717_v12  ;;  %v1369_v55 = vsel %vm3195_vm7, %v1367_v48, %v1368_v41  ;;  %v1057_v12 = vunpack.c.l.b16 %v993_v11  ;;  %v1016_v42 = vrot.slane %v1014_v4, 5 }
 0x115   : > { %2828 = vmatmul.msk.bf16.gmra.mxu3 %vm467_vm1, %v3793_v27  ;;  %2844 = vmatmul.msk.bf16.gmra.mxu0 %vm467_vm1, %v3781_v52  ;;  %v1412_v16 = vunpack.c.l.b16 %v1369_v55  ;;  %v1007_v48 = vrot.slane %v1005_v29, 4  ;;  %v1010_v41 = vrot.slane %v1008_v62, 5  ;;  %v1024_v11 = vshll.u32 %v3821_v25, 16 }
 0x116   : > { %4255 = vst [vmem:[#allocation29_spill] sm:$0xff] %v3790_v36  ;;  %v1021_v55 = vor.u32 %v1020_v37, %v1016_v42 }
 0x117   : > { %v1513_v28 = vpop.f32.mrf.mxu2 }
 0x118   : > { %v1581_v32 = vadd.f32 %v1513_v28, %v1229_v3  ;;  %v1650_v10 = vpop.f32.mrf.mxu3  ;;  %v1058_v3 = vunpack.c.l.b16 %v1003_v8  ;;  %v1022_v49 = vrot.slane %v1021_v55, 4 }
 0x119   : > { %v1163_v46 = vpop.f32.mrf.mxu1 }
 0x11a   : > { %v1718_v40 = vadd.f32 %v1650_v10, %v1581_v32  ;;  %v1230_v34 = vadd.f32 %v1163_v46, %v3403_v54  ;;  %v1807_v14 = vpop.f32.mrf.mxu0  ;;  %v3823_v32 = vpack.c.b16 %v1412_v16, %v1411_v26  ;;  %v1372_v54 = vrot.slane %v3756_v18, 5 }
 0x11b   : > { %v3828_v10 = vpack.c.b16 %v1058_v3, %v1057_v12  ;;  %v2794_v18 = vrot.slane %v3744_v7, 9  ;;  %v3856_v7 = vld [vmem:[%s3835_s26 + $0x4] sm:$0xf] }
 0x11c   : > { %v3818_v61 = vadd.f32 %v1805_v63, %v1718_v40  ;;  %v1011_v63 = vor.u32 %v1010_v41, %v1007_v48  ;;  %v1374_v62 = vrot.slane %v1372_v54, 4  ;;  %v1026_v40 = vrot.slane %v1024_v11, 5  ;;  %4257 = vst [vmem:[#allocation31_spill] sm:$0xff] %v3856_v7 }
 0x11d   : > { %v1756_v11 = vshrl.u32 %v3856_v7, 16 }
 0x11e   : > { %v1012_v4 = vrot.slane %v1011_v63, 4  ;;  %v1027_v41 = vsel %vm3186_vm6, %v1022_v49, %v1026_v40 }
 0x11f   : > { %v1515_v28 = vpop.f32.mrf.mxu2  ;;  %v1758_v40 = vrot.slane %v1756_v11, 4 }
 0x120   : > { %v1582_v36 = vadd.f32 %v1515_v28, %v1230_v34  ;;  %v1652_v45 = vpop.f32.mrf.mxu3  ;;  %v3853_v34 = vld [vmem:[%s3835_s26] sm:$0xf]  ;;  %v1017_v48 = vsel %vm3186_vm6, %v1012_v4, %v1016_v42 }
 0x121   : > { %v1166_v30 = vpop.f32.mrf.mxu1  ;;  %4256 = vst [vmem:[#allocation30_spill] sm:$0xff] %v3853_v34  ;;  %v1743_v37 = vshrl.u32 %v3853_v34, 16  ;;  %v1746_v28 = vshll.u32 %v3853_v34, 16  ;;  %v1059_v42 = vunpack.c.l.b16 %v1017_v48  ;;  %v3874_v34 = vld [vmem:[%s3835_s26 + $0x8] sm:$0x1] }
 0x122   : > { %v1719_v8 = vadd.f32 %v1652_v45, %v1582_v36  ;;  %v1231_v46 = vadd.f32 %v1166_v30, %v3425_v31  ;;  %v1810_v29 = vpop.f32.mrf.mxu0  ;;  %v1375_v45 = vrot.slane %v3775_v19, 5  ;;  %v3846_v36 = vld [vmem:[%s3082_s7 + $0xa8] sm:$0xff] }
 0x123   : > { %v1748_v4 = vrot.slane %v1746_v28, 5  ;;  %v1762_v28 = vshll.u32 %v3874_v34, 16 }
 0x124   : > { %2777 = vmatmul.msk.bf16.gmra.mxu1 %vm467_vm1, %v3781_v52  ;;  %2809 = vmatmul.msk.bf16.gmra.mxu2 %vm467_vm1, %v3823_v32  ;;  %v3843_v31 = vadd.f32 %v1807_v14, %v1719_v8  ;;  %v1373_v14 = vsel %vm3195_vm7, %v2794_v18, %v1372_v54  ;;  %v1376_v12 = vsel %vm3195_vm7, %v1374_v62, %v1375_v45  ;;  %v1752_v54 = vshll.u32 %v3856_v7, 16 }
 0x125   : > { %2829 = vmatmul.msk.bf16.gmra.mxu3 %vm467_vm1, %v3846_v36  ;;  %2845 = vmatmul.msk.bf16.gmra.mxu0 %vm467_vm1, %v3828_v10  ;;  %v1413_v8 = vunpack.c.l.b16 %v1373_v14  ;;  %v1060_v62 = vunpack.c.l.b16 %v1027_v41  ;;  %v1745_v45 = vrot.slane %v1743_v37, 4 }
 0x126   : > { %v1754_v49 = vrot.slane %v1752_v54, 5  ;;  %v1382_v54 = vrot.slane %v3821_v25, 5 }
 0x127   : > { %v1518_v26 = vpop.f32.mrf.mxu2  ;;  %v3878_v7 = vpack.c.b16 %v1060_v62, %v1059_v42  ;;  %v1749_v14 = vor.u32 %v1748_v4, %v1745_v45 }
 0x128   : > { %v1583_v16 = vadd.f32 %v1518_v26, %v1231_v46  ;;  %v1655_v19 = vpop.f32.mrf.mxu3  ;;  %v1414_v46 = vunpack.c.l.b16 %v1376_v12  ;;  %v1759_v37 = vor.u32 %v1758_v40, %v1754_v49 }
 0x129   : > { %v1168_v3 = vpop.f32.mrf.mxu1  ;;  %v1750_v11 = vrot.slane %v1749_v14, 4 }
 0x12a   : > { %v1720_v30 = vadd.f32 %v1655_v19, %v1583_v16  ;;  %v1232_v63 = vadd.f32 %v1168_v3, %v3461_v13  ;;  %v1812_v55 = vpop.f32.mrf.mxu0  ;;  %v3876_v19 = vpack.c.b16 %v1414_v46, %v1413_v8  ;;  %v1760_v8 = vrot.slane %v1759_v37, 4 }
 0x12b   : > { %v1764_v46 = vrot.slane %v1762_v28, 5  ;;  %v1755_v25 = vsel %vm3186_vm6, %v1750_v11, %v1754_v49 }
 0x12c   : > { %v3871_v18 = vadd.f32 %v1810_v29, %v1720_v30  ;;  %v1379_v29 = vrot.slane %v3803_v21, 5 }
 0x12e   : > { %v1381_v21 = vrot.slane %v1379_v29, 4 }
 0x12f   : > { %v1520_v26 = vpop.f32.mrf.mxu2 }
 0x130   : > { %v1584_v13 = vadd.f32 %v1520_v26, %v1232_v63  ;;  %v1657_v16 = vpop.f32.mrf.mxu3  ;;  %v3890_v63 = vld [vmem:[%s3082_s7 + $0xb4] sm:$0xff]  ;;  %v1383_v40 = vsel %vm3195_vm7, %v1381_v21, %v1382_v54 }
 0x131   : > { %v1171_v3 = vpop.f32.mrf.mxu1  ;;  %v1416_v14 = vunpack.c.l.b16 %v1383_v40 }
 0x132   : > { %v1721_v12 = vadd.f32 %v1657_v16, %v1584_v13  ;;  %v1233_v48 = vadd.f32 %v1171_v3, %v3485_v24  ;;  %v1815_v41 = vpop.f32.mrf.mxu0  ;;  %v2795_v24 = vrot.slane %v3800_v33, 9  ;;  %v1765_v16 = vsel %vm3186_vm6, %v1760_v8, %v1764_v46 }
 0x134   : > { %2778 = vmatmul.msk.bf16.gmra.mxu1 %vm467_vm1, %v3828_v10  ;;  %2810 = vmatmul.msk.bf16.gmra.mxu2 %vm467_vm1, %v3876_v19  ;;  %v3887_v30 = vadd.f32 %v1812_v55, %v1721_v12  ;;  %v1380_v4 = vsel %vm3195_vm7, %v2795_v24, %v1379_v29  ;;  %v1768_v29 = vunpack.c.l.b16 %v1765_v16 }
 0x135   : > { %2830 = vmatmul.msk.bf16.gmra.mxu3 %vm467_vm1, %v3890_v63  ;;  %2846 = vmatmul.msk.bf16.gmra.mxu0 %vm467_vm1, %v3878_v7  ;;  %v1415_v3 = vunpack.c.l.b16 %v1380_v4 }
 0x137   : > { %v1523_v42 = vpop.f32.mrf.mxu2  ;;  %v3909_v21 = vpack.c.b16 %v1416_v14, %v1415_v3 }
 0x138   : > { %v1585_v62 = vadd.f32 %v1523_v42, %v1233_v48  ;;  %v1660_v55 = vpop.f32.mrf.mxu3  ;;  %v1767_v48 = vunpack.c.l.b16 %v1755_v25 }
 0x139   : > { %v1173_v45 = vpop.f32.mrf.mxu1 }
 0x13a   : > { %v1722_v26 = vadd.f32 %v1660_v55, %v1585_v62  ;;  %v1234_v33 = vadd.f32 %v1173_v45, %v3524_v17  ;;  %v1817_v13 = vpop.f32.mrf.mxu0  ;;  %v3912_v17 = vld [vmem:[%s3835_s26] sm:$0xff]  ;;  %v3914_v42 = vpack.c.b16 %v1768_v29, %v1767_v48  ;;  %v2975_v29 = vld [vmem:[%s3082_s7 + $0x18] sm:$0xff] }
 0x13c   : > { %v3907_v12 = vadd.f32 %v1815_v41, %v1722_v26 }
 0x13f   : > { %v1525_v37 = vpop.f32.mrf.mxu2 }
 0x140   : > { %v1586_v28 = vadd.f32 %v1525_v37, %v1234_v33  ;;  %v1662_v24 = vpop.f32.mrf.mxu3 }
 0x141   : > { %v1176_v54 = vpop.f32.mrf.mxu1 }
 0x142   : > { %v1723_v49 = vadd.f32 %v1662_v24, %v1586_v28  ;;  %v1235_v11 = vadd.f32 %v1176_v54, %v3544_v39  ;;  %v1820_v8 = vpop.f32.mrf.mxu0 }
 0x144   : > { %2779 = vmatmul.msk.bf16.gmra.mxu1 %vm467_vm1, %v3878_v7  ;;  %2811 = vmatmul.msk.bf16.gmra.mxu2 %vm467_vm1, %v3909_v21  ;;  %v3921_v41 = vadd.f32 %v1817_v13, %v1723_v49 }
 0x145   : > { %2831 = vmatmul.msk.bf16.gmra.mxu3 %vm467_vm1, %v3912_v17  ;;  %2847 = vmatmul.msk.bf16.gmra.mxu0 %vm467_vm1, %v3914_v42 }
 0x147   : > { %v1528_v46 = vpop.f32.mrf.mxu2 }
 0x148   : > { %v1587_v62 = vadd.f32 %v1528_v46, %v1235_v11  ;;  %v1665_v55 = vpop.f32.mrf.mxu3 }
 0x149   : > { %v1178_v39 = vpop.f32.mrf.mxu1 }
 0x14a   : > { %v1724_v45 = vadd.f32 %v1665_v55, %v1587_v62  ;;  %v1236_v4 = vadd.f32 %v1178_v39, %v3580_v9  ;;  %v1822_v40 = vpop.f32.mrf.mxu0 }
 0x14c   : > { %v3928_v26 = vadd.f32 %v1820_v8, %v1724_v45 }
 0x14f   : > { %v1530_v33 = vpop.f32.mrf.mxu2 }
 0x150   : > { %v1588_v13 = vadd.f32 %v1530_v33, %v1236_v4  ;;  %v1667_v25 = vpop.f32.mrf.mxu3  ;;  %v2976_v4 = vld [vmem:[%s3082_s7 + $0x24] sm:$0xff] }
 0x151   : > { %v1181_v16 = vpop.f32.mrf.mxu1 }
 0x152   : > { %v1725_v3 = vadd.f32 %v1667_v25, %v1588_v13  ;;  %v1237_v14 = vadd.f32 %v1181_v16, %v3388_v50  ;;  %v1825_v48 = vpop.f32.mrf.mxu0 }
 0x154   : > { %2849 = vmatmul.msk.bf16.vlgmr.msra.gmra.mxu1 %vm467_vm1, %v3252_v35  ;;  %2869 = vmatmul.msk.bf16.vlgmr.msra.gmra.mxu2 %vm467_vm1, %v2975_v29  ;;  %v3935_v37 = vadd.f32 %v1822_v40, %v1725_v3 }
 0x155   : > { %2885 = vmatmul.msk.bf16.vlgmr.msra.gmra.mxu3 %vm467_vm1, %v3255_v38  ;;  %2902 = vmatmul.msk.bf16.vlgmr.msra.gmra.mxu0 %vm467_vm1, %v3285_v2 }
 0x157   : > { %v1533_v9 = vpop.f32.mrf.mxu2 }
 0x158   : > { %v1589_v28 = vadd.f32 %v1533_v9, %v1237_v14  ;;  %v1670_v24 = vpop.f32.mrf.mxu3 }
 0x159   : > { %v1183_v50 = vpop.f32.mrf.mxu1 }
 0x15a   : > { %v1726_v54 = vadd.f32 %v1670_v24, %v1589_v28  ;;  %v1238_v49 = vadd.f32 %v1183_v50, %v3415_v23  ;;  %v1827_v35 = vpop.f32.mrf.mxu0 }
 0x15c   : > { %v3942_v11 = vadd.f32 %v1825_v48, %v1726_v54  ;;  %v2977_v54 = vld [vmem:[%s3082_s7 + $0x30] sm:$0xff] }
 0x15f   : > { %v1535_v8 = vpop.f32.mrf.mxu2 }
 0x160   : > { %v1590_v46 = vadd.f32 %v1535_v8, %v1238_v49  ;;  %v1672_v62 = vpop.f32.mrf.mxu3 }
 0x161   : > { %v1186_v55 = vpop.f32.mrf.mxu1 }
 0x162   : > { %v1727_v39 = vadd.f32 %v1672_v62, %v1590_v46  ;;  %v1239_v38 = vadd.f32 %v1186_v55, %v3452_v53  ;;  %v1830_v45 = vpop.f32.mrf.mxu0 }
 0x164   : > { %2850 = vmatmul.msk.bf16.gmra.mxu1 %vm467_vm1, %v3285_v2  ;;  %2870 = vmatmul.msk.bf16.gmra.mxu2 %vm467_vm1, %v2976_v4  ;;  %v3949_v40 = vadd.f32 %v1827_v35, %v1727_v39  ;;  %v4260_v35 = vld [vmem:[#allocation3_spill] sm:$0xff] }
 0x165   : > { %2886 = vmatmul.msk.bf16.gmra.mxu3 %vm467_vm1, %v3287_v6  ;;  %2903 = vmatmul.msk.bf16.gmra.mxu0 %vm467_vm1, %v3320_v47  ;;  %v4258_v6 = vld [vmem:[#allocation13_spill] sm:$0xff] }
 0x167   : > { %v1538_v23 = vpop.f32.mrf.mxu2 }
 0x168   : > { %v1591_v33 = vadd.f32 %v1538_v23, %v1239_v38  ;;  %v1675_v13 = vpop.f32.mrf.mxu3  ;;  %v4261_v38 = vld [vmem:[#allocation15_spill] sm:$0xff] }
 0x169   : > { %v1188_v53 = vpop.f32.mrf.mxu1 }
 0x16a   : > { %v1728_v25 = vadd.f32 %v1675_v13, %v1591_v33  ;;  %v1240_v16 = vadd.f32 %v1188_v53, %v3476_v1  ;;  %v1832_v2 = vpop.f32.mrf.mxu0  ;;  %v4259_v1 = vld [vmem:[#allocation2_spill] sm:$0xff] }
 0x16c   : > { %v3956_v3 = vadd.f32 %v1830_v45, %v1728_v25 }
 0x16f   : > { %v1540_v14 = vpop.f32.mrf.mxu2 }
 0x170   : > { %v1592_v48 = vadd.f32 %v1540_v14, %v1240_v16  ;;  %v1677_v29 = vpop.f32.mrf.mxu3  ;;  %v4262_v16 = vld [vmem:[#allocation19_spill] sm:$0xff] }
 0x171   : > { %v1191_v9 = vpop.f32.mrf.mxu1 }
 0x172   : > { %v1729_v28 = vadd.f32 %v1677_v29, %v1592_v48  ;;  %v1241_v24 = vadd.f32 %v1191_v9, %v4258_v6  ;;  %v1835_v50 = vpop.f32.mrf.mxu0  ;;  %v2978_v48 = vld [vmem:[%s3082_s7 + $0x3c] sm:$0xff]  ;;  %v4263_v9 = vld [vmem:[#allocation4_spill] sm:$0xff] }
 0x174   : > { %2851 = vmatmul.msk.bf16.gmra.mxu1 %vm467_vm1, %v3320_v47  ;;  %2871 = vmatmul.msk.bf16.gmra.mxu2 %vm467_vm1, %v2977_v54  ;;  %v3963_v49 = vadd.f32 %v1832_v2, %v1729_v28  ;;  %v4264_v28 = vld [vmem:[#allocation6_spill] sm:$0xff] }
 0x175   : > { %2887 = vmatmul.msk.bf16.gmra.mxu3 %vm467_vm1, %v4259_v1  ;;  %2904 = vmatmul.msk.bf16.gmra.mxu0 %vm467_vm1, %v4260_v35 }
 0x177   : > { %v1543_v8 = vpop.f32.mrf.mxu2 }
 0x178   : > { %v1593_v46 = vadd.f32 %v1543_v8, %v1241_v24  ;;  %v1680_v62 = vpop.f32.mrf.mxu3  ;;  %v4265_v8 = vld [vmem:[#allocation21_spill] sm:$0xff] }
 0x179   : > { %v1193_v55 = vpop.f32.mrf.mxu1 }
 0x17a   : > { %v1730_v39 = vadd.f32 %v1680_v62, %v1593_v46  ;;  %v1242_v45 = vadd.f32 %v1193_v55, %v4261_v38  ;;  %v1837_v47 = vpop.f32.mrf.mxu0 }
 0x17c   : > { %v3970_v4 = vadd.f32 %v1835_v50, %v1730_v39 }
 0x17f   : > { %v1545_v23 = vpop.f32.mrf.mxu2 }
 0x180   : > { %v1594_v33 = vadd.f32 %v1545_v23, %v1242_v45  ;;  %v1682_v13 = vpop.f32.mrf.mxu3  ;;  %v4266_v23 = vld [vmem:[#allocation5_spill] sm:$0xff] }
 0x181   : > { %v1196_v53 = vpop.f32.mrf.mxu1 }
 0x182   : > { %v1731_v25 = vadd.f32 %v1682_v13, %v1594_v33  ;;  %v1243_v2 = vadd.f32 %v1196_v53, %v4262_v16  ;;  %v1840_v14 = vpop.f32.mrf.mxu0  ;;  %v2979_v53 = vld [vmem:[%s3082_s7 + $0x48] sm:$0xff]  ;;  %v4267_v16 = vld [vmem:[#allocation8_spill] sm:$0xff] }
 0x184   : > { %2852 = vmatmul.msk.bf16.gmra.mxu1 %vm467_vm1, %v4260_v35  ;;  %2872 = vmatmul.msk.bf16.gmra.mxu2 %vm467_vm1, %v2978_v48  ;;  %v3977_v29 = vadd.f32 %v1837_v47, %v1731_v25 }
 0x185   : > { %2888 = vmatmul.msk.bf16.gmra.mxu3 %vm467_vm1, %v4263_v9  ;;  %2905 = vmatmul.msk.bf16.gmra.mxu0 %vm467_vm1, %v4264_v28 }
 0x187   : > { %v1548_v6 = vpop.f32.mrf.mxu2 }
 0x188   : > { %v1595_v24 = vadd.f32 %v1548_v6, %v1243_v2  ;;  %v1685_v50 = vpop.f32.mrf.mxu3  ;;  %v4268_v2 = vld [vmem:[#allocation10_spill] sm:$0xff] }
 0x189   : > { %v1198_v54 = vpop.f32.mrf.mxu1 }
 0x18a   : > { %v1732_v1 = vadd.f32 %v1685_v50, %v1595_v24  ;;  %v1244_v46 = vadd.f32 %v1198_v54, %v4265_v8  ;;  %v1842_v35 = vpop.f32.mrf.mxu0  ;;  %v4269_v50 = vld [vmem:[#allocation7_spill] sm:$0xff] }
 0x18c   : > { %v3984_v62 = vadd.f32 %v1840_v14, %v1732_v1 }
 0x18f   : > { %v1550_v55 = vpop.f32.mrf.mxu2 }
 0x190   : > { %v1596_v39 = vadd.f32 %v1550_v55, %v1244_v46  ;;  %v1687_v38 = vpop.f32.mrf.mxu3 }
 0x191   : > { %v1201_v45 = vpop.f32.mrf.mxu1 }
 0x192   : > { %v1733_v47 = vadd.f32 %v1687_v38, %v1596_v39  ;;  %v1245_v33 = vadd.f32 %v1201_v45, %v4266_v23  ;;  %v1845_v13 = vpop.f32.mrf.mxu0  ;;  %v4270_v38 = vld [vmem:[#allocation9_spill] sm:$0xff] }
 0x193   : > { %v2980_v23 = vld [vmem:[%s3082_s7 + $0x54] sm:$0xff] }
 0x194   : > { %2853 = vmatmul.msk.bf16.gmra.mxu1 %vm467_vm1, %v4264_v28  ;;  %2873 = vmatmul.msk.bf16.gmra.mxu2 %vm467_vm1, %v2979_v53  ;;  %v3991_v25 = vadd.f32 %v1842_v35, %v1733_v47  ;;  %v4271_v53 = vld [vmem:[#allocation12_spill] sm:$0xff] }
 0x195   : > { %2889 = vmatmul.msk.bf16.gmra.mxu3 %vm467_vm1, %v4267_v16  ;;  %2906 = vmatmul.msk.bf16.gmra.mxu0 %vm467_vm1, %v4268_v2 }
 0x197   : > { %v1553_v14 = vpop.f32.mrf.mxu2 }
 0x198   : > { %v1597_v48 = vadd.f32 %v1553_v14, %v1245_v33  ;;  %v1690_v9 = vpop.f32.mrf.mxu3 }
 0x199   : > { %v1203_v6 = vpop.f32.mrf.mxu1 }
 0x19a   : > { %v1734_v24 = vadd.f32 %v1690_v9, %v1597_v48  ;;  %v1246_v54 = vadd.f32 %v1203_v6, %v4269_v50  ;;  %v1847_v28 = vpop.f32.mrf.mxu0 }
 0x19c   : > { %v3998_v1 = vadd.f32 %v1845_v13, %v1734_v24  ;;  %v4272_v13 = vld [vmem:[#allocation16_spill] sm:$0xff]  ;;  %v4273_v24 = vld [vmem:[#allocation11_spill] sm:$0xff] }
 0x19f   : > { %v1555_v8 = vpop.f32.mrf.mxu2 }
 0x1a0   : > { %v1598_v46 = vadd.f32 %v1555_v8, %v1246_v54  ;;  %v1692_v35 = vpop.f32.mrf.mxu3 }
 0x1a1   : > { %v1206_v55 = vpop.f32.mrf.mxu1 }
 0x1a2   : > { %v1735_v39 = vadd.f32 %v1692_v35, %v1598_v46  ;;  %v1247_v45 = vadd.f32 %v1206_v55, %v4270_v38  ;;  %v1850_v47 = vpop.f32.mrf.mxu0 }
 0x1a4   : > { %2854 = vmatmul.msk.bf16.gmra.mxu1 %vm467_vm1, %v4268_v2  ;;  %2874 = vmatmul.msk.bf16.gmra.mxu2 %vm467_vm1, %v2980_v23  ;;  %v4005_v33 = vadd.f32 %v1847_v28, %v1735_v39  ;;  %v4274_v39 = vld [vmem:[#allocation14_spill] sm:$0xff] }
 0x1a5   : > { %2890 = vmatmul.msk.bf16.gmra.mxu3 %vm467_vm1, %v4271_v53  ;;  %2907 = vmatmul.msk.bf16.gmra.mxu0 %vm467_vm1, %v4272_v13 }
 0x1a7   : > { %v1558_v16 = vpop.f32.mrf.mxu2 }
 0x1a8   : > { %v1599_v14 = vadd.f32 %v1558_v16, %v1247_v45  ;;  %v1695_v48 = vpop.f32.mrf.mxu3  ;;  %v2981_v45 = vld [vmem:[%s3082_s7 + $0x60] sm:$0xff]  ;;  %v4276_v16 = vld [vmem:[#allocation17_spill] sm:$0xff] }
 0x1a9   : > { %v1208_v9 = vpop.f32.mrf.mxu1 }
 0x1aa   : > { %v1736_v6 = vadd.f32 %v1695_v48, %v1599_v14  ;;  %v1248_v50 = vadd.f32 %v1208_v9, %v4273_v24  ;;  %v1852_v2 = vpop.f32.mrf.mxu0 }
 0x1ac   : > { %v4012_v54 = vadd.f32 %v1850_v47, %v1736_v6  ;;  %v4277_v47 = vld [vmem:[#allocation22_spill] sm:$0xff] }
 0x1af   : > { %v1560_v8 = vpop.f32.mrf.mxu2 }
 0x1b0   : > { %v1600_v28 = vadd.f32 %v1560_v8, %v1248_v50  ;;  %v1697_v46 = vpop.f32.mrf.mxu3  ;;  %v4278_v50 = vld [vmem:[#allocation18_spill] sm:$0xff] }
 0x1b1   : > { %v1211_v35 = vpop.f32.mrf.mxu1 }
 0x1b2   : > { %v1737_v55 = vadd.f32 %v1697_v46, %v1600_v28  ;;  %v1249_v38 = vadd.f32 %v1211_v35, %v4274_v39  ;;  %v1855_v23 = vpop.f32.mrf.mxu0 }
 0x1b4   : > { %2855 = vmatmul.msk.bf16.gmra.mxu1 %vm467_vm1, %v4272_v13  ;;  %2875 = vmatmul.msk.bf16.gmra.mxu2 %vm467_vm1, %v2981_v45  ;;  %v4019_v53 = vadd.f32 %v1852_v2, %v1737_v55  ;;  %v4279_v45 = vld [vmem:[#allocation20_spill] sm:$0xff] }
 0x1b5   : > { %2891 = vmatmul.msk.bf16.gmra.mxu3 %vm467_vm1, %v4276_v16  ;;  %2908 = vmatmul.msk.bf16.gmra.mxu0 %vm467_vm1, %v4277_v47 }
 0x1b6   : > { %4275 = vst [vmem:[#allocation13_spill] sm:$0xff] %v4019_v53 }
 0x1b7   : > { %v1563_v14 = vpop.f32.mrf.mxu2 }
 0x1b8   : > { %v1601_v48 = vadd.f32 %v1563_v14, %v1249_v38  ;;  %v1700_v9 = vpop.f32.mrf.mxu3  ;;  %v2982_v38 = vld [vmem:[%s3082_s7 + $0x6c] sm:$0xff] }
 0x1b9   : > { %v1213_v6 = vpop.f32.mrf.mxu1 }
 0x1ba   : > { %v1738_v24 = vadd.f32 %v1700_v9, %v1601_v48  ;;  %v1250_v8 = vadd.f32 %v1213_v6, %v4278_v50  ;;  %v1857_v13 = vpop.f32.mrf.mxu0  ;;  %v4280_v50 = vld [vmem:[#allocation23_spill] sm:$0xff] }
 0x1bc   : > { %v4026_v28 = vadd.f32 %v1855_v23, %v1738_v24 }
 0x1bf   : > { %v1565_v46 = vpop.f32.mrf.mxu2 }
 0x1c0   : > { %v1602_v2 = vadd.f32 %v1565_v46, %v1250_v8  ;;  %v1702_v35 = vpop.f32.mrf.mxu3 }
 0x1c1   : > { %v1216_v55 = vpop.f32.mrf.mxu1 }
 0x1c2   : > { %v1739_v39 = vadd.f32 %v1702_v35, %v1602_v2  ;;  %v1251_v16 = vadd.f32 %v1216_v55, %v4279_v45  ;;  %v1860_v53 = vpop.f32.mrf.mxu0  ;;  %v2983_v45 = vld [vmem:[%s3082_s7 + $0x78] sm:$0xff] }
 0x1c4   : > { %2856 = vmatmul.msk.bf16.gmra.mxu1 %vm467_vm1, %v4277_v47  ;;  %2876 = vmatmul.msk.bf16.gmra.mxu2 %vm467_vm1, %v2982_v38  ;;  %v4033_v14 = vadd.f32 %v1857_v13, %v1739_v39 }
 0x1c5   : > { %2892 = vmatmul.msk.bf16.gmra.mxu3 %vm467_vm1, %v3601_v60  ;;  %2909 = vmatmul.msk.bf16.gmra.mxu0 %vm467_vm1, %v3641_v56 }
 0x1c7   : > { %v1568_v23 = vpop.f32.mrf.mxu2 }
 0x1c8   : > { %v1603_v48 = vadd.f32 %v1568_v23, %v1251_v16  ;;  %v1705_v9 = vpop.f32.mrf.mxu3 }
 0x1c9   : > { %v1218_v6 = vpop.f32.mrf.mxu1 }
 0x1ca   : > { %v1740_v24 = vadd.f32 %v1705_v9, %v1603_v48  ;;  %v1252_v8 = vadd.f32 %v1218_v6, %v4280_v50  ;;  %v1862_v47 = vpop.f32.mrf.mxu0 }
 0x1cc   : > { %v4040_v46 = vadd.f32 %v1860_v53, %v1740_v24 }
 0x1cf   : > { %v1570_v2 = vpop.f32.mrf.mxu2 }
 0x1d0   : > { %v1604_v13 = vadd.f32 %v1570_v2, %v1252_v8  ;;  %v1707_v35 = vpop.f32.mrf.mxu3 }
 0x1d1   : > { %v1928_v55 = vpop.f32.mrf.mxu1 }
 0x1d2   : > { %v1741_v60 = vadd.f32 %v1707_v35, %v1604_v13  ;;  %v2359_v39 = vpop.f32.mrf.mxu0  ;;  %v2008_v53 = vadd.f32 %v1928_v55, %v3634_v20 }
 0x1d4   : > { %2857 = vmatmul.msk.bf16.gmra.mxu1 %vm467_vm1, %v3641_v56  ;;  %2877 = vmatmul.msk.bf16.gmra.mxu2 %vm467_vm1, %v2983_v45  ;;  %v4047_v16 = vadd.f32 %v1862_v47, %v1741_v60  ;;  %v2984_v60 = vld [vmem:[%s3082_s7 + $0x84] sm:$0xff] }
 0x1d5   : > { %2893 = vmatmul.msk.bf16.gmra.mxu3 %vm467_vm1, %v3645_v43  ;;  %2910 = vmatmul.msk.bf16.gmra.mxu0 %vm467_vm1, %v3686_v58 }
 0x1d7   : > { %v2061_v38 = vpop.f32.mrf.mxu2 }
 0x1d8   : > { %v2141_v23 = vadd.f32 %v2061_v38, %v2008_v53  ;;  %v2220_v48 = vpop.f32.mrf.mxu3 }
 0x1d9   : > { %v1930_v9 = vpop.f32.mrf.mxu1 }
 0x1da   : > { %v2300_v56 = vadd.f32 %v2220_v48, %v2141_v23  ;;  %v2361_v6 = vpop.f32.mrf.mxu0  ;;  %v2009_v50 = vadd.f32 %v1930_v9, %v3653_v51 }
 0x1dc   : > { %v2439_v24 = vadd.f32 %v2359_v39, %v2300_v56 }
 0x1de   : > { %v2471_v43 = vmax.f32 %v2439_v24, 0.0 }
 0x1df   : > { %v2063_v20 = vpop.f32.mrf.mxu2 }
 0x1e0   : > { %2503 = vst [vmem:[%s4057_s29] sm:$0xff] %v2471_v43  ;;  %v2142_v8 = vadd.f32 %v2063_v20, %v2009_v50  ;;  %v2222_v47 = vpop.f32.mrf.mxu3 }
 0x1e1   : > { %v1933_v2 = vpop.f32.mrf.mxu1 }
 0x1e2   : > { %v2301_v13 = vadd.f32 %v2222_v47, %v2142_v8  ;;  %v2364_v35 = vpop.f32.mrf.mxu0  ;;  %v2010_v39 = vadd.f32 %v1933_v2, %v3679_v57  ;;  %v4282_v2 = vld [vmem:[#allocation27_spill] sm:$0xff] }
 0x1e4   : > { %v2440_v55 = vadd.f32 %v2361_v6, %v2301_v13  ;;  %2858 = vmatmul.msk.bf16.gmra.mxu1 %vm467_vm1, %v3686_v58  ;;  %2878 = vmatmul.msk.bf16.gmra.mxu2 %vm467_vm1, %v2984_v60  ;;  %v4281_v6 = vld [vmem:[#allocation24_spill] sm:$0xff] }
 0x1e5   : > { %2894 = vmatmul.msk.bf16.gmra.mxu3 %vm467_vm1, %v3689_v44  ;;  %2911 = vmatmul.msk.bf16.gmra.mxu0 %vm467_vm1, %v3732_v59 }
 0x1e6   : > { %v2472_v51 = vmax.f32 %v2440_v55, 0.0 }
 0x1e7   : > { %v2066_v45 = vpop.f32.mrf.mxu2 }
 0x1e8   : > { %2504 = vst [vmem:[%s4057_s29 + $0x8] sm:$0xff] %v2472_v51  ;;  %v2143_v53 = vadd.f32 %v2066_v45, %v2010_v39  ;;  %v2225_v38 = vpop.f32.mrf.mxu3 }
 0x1e9   : > { %v1935_v23 = vpop.f32.mrf.mxu1 }
 0x1ea   : > { %v2302_v48 = vadd.f32 %v2225_v38, %v2143_v53  ;;  %v2366_v58 = vpop.f32.mrf.mxu0  ;;  %v2011_v24 = vadd.f32 %v1935_v23, %v4281_v6 }
 0x1ec   : > { %v2441_v9 = vadd.f32 %v2364_v35, %v2302_v48  ;;  %v4283_v35 = vld [vmem:[#allocation25_spill] sm:$0xff]  ;;  %v4284_v48 = vld [vmem:[#allocation26_spill] sm:$0xff] }
 0x1ee   : > { %v2473_v56 = vmax.f32 %v2441_v9, 0.0 }
 0x1ef   : > { %v2068_v43 = vpop.f32.mrf.mxu2 }
 0x1f0   : > { %2505 = vst [vmem:[%s4057_s29 + $0x10] sm:$0xff] %v2473_v56  ;;  %v2144_v44 = vadd.f32 %v2068_v43, %v2011_v24  ;;  %v2227_v50 = vpop.f32.mrf.mxu3 }
 0x1f1   : > { %v1938_v20 = vpop.f32.mrf.mxu1 }
 0x1f2   : > { %v2303_v8 = vadd.f32 %v2227_v50, %v2144_v44  ;;  %v2369_v47 = vpop.f32.mrf.mxu0  ;;  %v2012_v55 = vadd.f32 %v1938_v20, %v4283_v35  ;;  %v4285_v20 = vld [vmem:[#allocation28_spill] sm:$0xff] }
 0x1f4   : > { %v2442_v57 = vadd.f32 %v2366_v58, %v2303_v8  ;;  %2859 = vmatmul.msk.bf16.gmra.mxu1 %vm467_vm1, %v3732_v59  ;;  %2879 = vmatmul.msk.bf16.gmra.mxu2 %vm467_vm1, %v4282_v2 }
 0x1f5   : > { %2895 = vmatmul.msk.bf16.gmra.mxu3 %vm467_vm1, %v3734_v5  ;;  %2912 = vmatmul.msk.bf16.gmra.mxu0 %vm467_vm1, %v3777_v0 }
 0x1f6   : > { %v2474_v13 = vmax.f32 %v2442_v57, 0.0 }
 0x1f7   : > { %v2071_v60 = vpop.f32.mrf.mxu2 }
 0x1f8   : > { %2506 = vst [vmem:[%s4057_s29 + $0x18] sm:$0xff] %v2474_v13  ;;  %v2145_v51 = vadd.f32 %v2071_v60, %v2012_v55  ;;  %v2230_v39 = vpop.f32.mrf.mxu3 }
 0x1f9   : > { %v1940_v45 = vpop.f32.mrf.mxu1 }
 0x1fa   : > { %v2304_v53 = vadd.f32 %v2230_v39, %v2145_v51  ;;  %v2371_v59 = vpop.f32.mrf.mxu0  ;;  %v2013_v58 = vadd.f32 %v1940_v45, %v4284_v48 }
 0x1fc   : > { %v2443_v38 = vadd.f32 %v2369_v47, %v2304_v53 }
 0x1fe   : > { %v2475_v23 = vmax.f32 %v2443_v38, 0.0 }
 0x1ff   : > { %v2073_v9 = vpop.f32.mrf.mxu2 }
 0x200   : > { %2507 = vst [vmem:[%s4057_s29 + $0x20] sm:$0xff] %v2475_v23  ;;  %v2146_v5 = vadd.f32 %v2073_v9, %v2013_v58  ;;  %v2232_v56 = vpop.f32.mrf.mxu3 }
 0x201   : > { %v1943_v6 = vpop.f32.mrf.mxu1 }
 0x202   : > { %v2305_v24 = vadd.f32 %v2232_v56, %v2146_v5  ;;  %v2374_v43 = vpop.f32.mrf.mxu0  ;;  %v2014_v8 = vadd.f32 %v1943_v6, %v4285_v20 }
 0x204   : > { %v2444_v44 = vadd.f32 %v2371_v59, %v2305_v24  ;;  %2860 = vmatmul.msk.bf16.gmra.mxu1 %vm467_vm1, %v3777_v0  ;;  %2880 = vmatmul.msk.bf16.gmra.mxu2 %vm467_vm1, %v3793_v27  ;;  %v4286_v27 = vld [vmem:[#allocation29_spill] sm:$0xff] }
 0x205   : > { %2896 = vmatmul.msk.bf16.gmra.mxu3 %vm467_vm1, %v3781_v52  ;;  %2913 = vmatmul.msk.bf16.gmra.mxu0 %vm467_vm1, %v3823_v32 }
 0x206   : > { %v2476_v50 = vmax.f32 %v2444_v44, 0.0 }
 0x207   : > { %v2076_v47 = vpop.f32.mrf.mxu2 }
 0x208   : > { %2508 = vst [vmem:[%s4057_s29 + $0x28] sm:$0xff] %v2476_v50  ;;  %v2147_v57 = vadd.f32 %v2076_v47, %v2014_v8  ;;  %v2235_v2 = vpop.f32.mrf.mxu3  ;;  %v4287_v8 = vld [vmem:[#allocation31_spill] sm:$0xff] }
 0x209   : > { %v1945_v13 = vpop.f32.mrf.mxu1  ;;  %v1900_v47 = vrot.slane %v4287_v8, 5 }
 0x20a   : > { %v2306_v35 = vadd.f32 %v2235_v2, %v2147_v57  ;;  %v2376_v0 = vpop.f32.mrf.mxu0  ;;  %v2015_v51 = vadd.f32 %v1945_v13, %v4286_v27 }
 0x20c   : > { %v2445_v55 = vadd.f32 %v2374_v43, %v2306_v35 }
 0x20e   : > { %v2477_v60 = vmax.f32 %v2445_v55, 0.0  ;;  %v1903_v55 = vrot.slane %v3874_v34, 5 }
 0x20f   : > { %v2078_v39 = vpop.f32.mrf.mxu2 }
 0x210   : > { %2509 = vst [vmem:[%s4057_s29 + $0x30] sm:$0xff] %v2477_v60  ;;  %v2148_v52 = vadd.f32 %v2078_v39, %v2015_v51  ;;  %v2237_v45 = vpop.f32.mrf.mxu3  ;;  %v379_v51 = vld [vmem:[%s3835_s26 + $0xc] sm:$0xf]  ;;  %v380_v39 = vld [vmem:[%s3835_s26 + $0x10] sm:$0xf] }
 0x211   : > { %v1948_v53 = vpop.f32.mrf.mxu1 }
 0x212   : > { %v2307_v59 = vadd.f32 %v2237_v45, %v2148_v52  ;;  %v2379_v38 = vpop.f32.mrf.mxu0  ;;  %v2016_v58 = vadd.f32 %v1948_v53, %v3818_v61 }
 0x214   : > { %v2446_v23 = vadd.f32 %v2376_v0, %v2307_v59  ;;  %2861 = vmatmul.msk.bf16.gmra.mxu1 %vm467_vm1, %v3823_v32  ;;  %2881 = vmatmul.msk.bf16.gmra.mxu2 %vm467_vm1, %v3846_v36  ;;  %v1902_v0 = vrot.slane %v1900_v47, 4  ;;  %v2177_v59 = vshll.u32 %v379_v51, 16 }
 0x215   : > { %2897 = vmatmul.msk.bf16.gmra.mxu3 %vm467_vm1, %v3828_v10  ;;  %2914 = vmatmul.msk.bf16.gmra.mxu0 %vm467_vm1, %v3876_v19 }
 0x216   : > { %v2478_v48 = vmax.f32 %v2446_v23, 0.0  ;;  %v1904_v34 = vsel %vm3195_vm7, %v1902_v0, %v1903_v55  ;;  %v2187_v23 = vshrl.u32 %v380_v39, 16 }
 0x217   : > { %v2081_v9 = vpop.f32.mrf.mxu2 }
 0x218   : > { %2510 = vst [vmem:[%s4057_s29 + $0x38] sm:$0xff] %v2478_v48  ;;  %v2149_v5 = vadd.f32 %v2081_v9, %v2016_v58  ;;  %v2240_v56 = vpop.f32.mrf.mxu3 }
 0x219   : > { %v1950_v6 = vpop.f32.mrf.mxu1 }
 0x21a   : > { %v2308_v24 = vadd.f32 %v2240_v56, %v2149_v5  ;;  %v2381_v32 = vpop.f32.mrf.mxu0  ;;  %v2017_v36 = vadd.f32 %v1950_v6, %v3843_v31  ;;  %v4288_v31 = vld [vmem:[#allocation30_spill] sm:$0xff]  ;;  %v1907_v5 = vunpack.c.l.b16 %v1904_v34  ;;  %v2179_v6 = vrot.slane %v2177_v59, 5 }
 0x21b   : > { %v2848_v35 = vrot.slane %v4288_v31, 9 }
 0x21c   : > { %v2447_v43 = vadd.f32 %v2379_v38, %v2308_v24  ;;  %v2183_v38 = vshll.u32 %v380_v39, 16 }
 0x21d   : > { %v1901_v45 = vsel %vm3195_vm7, %v2848_v35, %v1900_v47  ;;  %v2335_v35 = vrot.slane %v380_v39, 5 }
 0x21e   : > { %v2479_v44 = vmax.f32 %v2447_v43, 0.0  ;;  %v1906_v9 = vunpack.c.l.b16 %v1901_v45  ;;  %v2185_v24 = vrot.slane %v2183_v38, 5 }
 0x21f   : > { %v2083_v50 = vpop.f32.mrf.mxu2  ;;  %v2337_v39 = vrot.slane %v2335_v35, 4 }
 0x220   : > { %2511 = vst [vmem:[%s4057_s29 + $0x40] sm:$0xff] %v2479_v44  ;;  %v2150_v10 = vadd.f32 %v2083_v50, %v2017_v36  ;;  %v2242_v20 = vpop.f32.mrf.mxu3  ;;  %v381_v36 = vld [vmem:[%s3835_s26 + $0x14] sm:$0x1]  ;;  %v1908_v47 = vpack.c.b16 %v1907_v5, %v1906_v9 }
 0x221   : > { %v1953_v61 = vpop.f32.mrf.mxu1 }
 0x222   : > { %v2309_v57 = vadd.f32 %v2242_v20, %v2150_v10  ;;  %v2384_v2 = vpop.f32.mrf.mxu0  ;;  %v2018_v27 = vadd.f32 %v1953_v61, %v3871_v18 }
 0x224   : > { %v2448_v13 = vadd.f32 %v2381_v32, %v2309_v57  ;;  %2862 = vmatmul.msk.bf16.gmra.mxu1 %vm467_vm1, %v3876_v19  ;;  %2882 = vmatmul.msk.bf16.gmra.mxu2 %vm467_vm1, %v3890_v63  ;;  %v2189_v32 = vrot.slane %v2187_v23, 4 }
 0x225   : > { %2898 = vmatmul.msk.bf16.gmra.mxu3 %vm467_vm1, %v3878_v7  ;;  %2915 = vmatmul.msk.bf16.gmra.mxu0 %vm467_vm1, %v3909_v21  ;;  %v2174_v7 = vshrl.u32 %v379_v51, 16 }
 0x226   : > { %v2480_v60 = vmax.f32 %v2448_v13, 0.0  ;;  %v2190_v57 = vor.u32 %v2189_v32, %v2185_v24  ;;  %v2193_v13 = vshll.u32 %v381_v36, 16 }
 0x227   : > { %v2086_v19 = vpop.f32.mrf.mxu2  ;;  %v2176_v56 = vrot.slane %v2174_v7, 4 }
 0x228   : > { %2512 = vst [vmem:[%s4057_s29 + $0x48] sm:$0xff] %v2480_v60  ;;  %v2151_v52 = vadd.f32 %v2086_v19, %v2018_v27  ;;  %v2245_v63 = vpop.f32.mrf.mxu3  ;;  %v2191_v55 = vrot.slane %v2190_v57, 4  ;;  %v2195_v60 = vrot.slane %v2193_v13, 5  ;;  %v2901_v27 = vrot.slane %v379_v51, 9 }
 0x229   : > { %v1955_v53 = vpop.f32.mrf.mxu1  ;;  %v2180_v61 = vor.u32 %v2179_v6, %v2176_v56 }
 0x22a   : > { %v2310_v18 = vadd.f32 %v2245_v63, %v2151_v52  ;;  %v2386_v48 = vpop.f32.mrf.mxu0  ;;  %v2019_v44 = vadd.f32 %v1955_v53, %v3887_v30  ;;  %v2338_v63 = vrot.slane %v381_v36, 5  ;;  %v2196_v51 = vsel %vm3186_vm6, %v2191_v55, %v2195_v60 }
 0x22b   : > { %v2181_v30 = vrot.slane %v2180_v61, 4 }
 0x22c   : > { %v2449_v58 = vadd.f32 %v2384_v2, %v2310_v18  ;;  %v2339_v59 = vsel %vm3195_vm7, %v2337_v39, %v2338_v63  ;;  %v2199_v18 = vunpack.c.l.b16 %v2196_v51 }
 0x22e   : > { %v2481_v43 = vmax.f32 %v2449_v58, 0.0  ;;  %v2342_v58 = vunpack.c.l.b16 %v2339_v59 }
 0x22f   : > { %v2088_v50 = vpop.f32.mrf.mxu2 }
 0x230   : > { %2513 = vst [vmem:[%s4057_s29 + $0x50] sm:$0xff] %v2481_v43  ;;  %v2152_v10 = vadd.f32 %v2088_v50, %v2019_v44  ;;  %v2247_v20 = vpop.f32.mrf.mxu3 }
 0x231   : > { %v1958_v8 = vpop.f32.mrf.mxu1 }
 0x232   : > { %v2311_v2 = vadd.f32 %v2247_v20, %v2152_v10  ;;  %v2389_v31 = vpop.f32.mrf.mxu0  ;;  %v2020_v52 = vadd.f32 %v1958_v8, %v3907_v12  ;;  %v2336_v12 = vsel %vm3195_vm7, %v2901_v27, %v2335_v35 }
 0x234   : > { %v2450_v0 = vadd.f32 %v2386_v48, %v2311_v2  ;;  %2863 = vmatmul.msk.bf16.gmra.mxu1 %vm467_vm1, %v3909_v21  ;;  %2883 = vmatmul.msk.bf16.gmra.mxu2 %vm467_vm1, %v3912_v17  ;;  %v2341_v48 = vunpack.c.l.b16 %v2336_v12 }
 0x235   : > { %2899 = vmatmul.msk.bf16.gmra.mxu3 %vm467_vm1, %v3914_v42  ;;  %2916 = vmatmul.msk.bf16.gmra.mxu0 %vm467_vm1, %v1908_v47  ;;  %v2186_v42 = vsel %vm3186_vm6, %v2181_v30, %v2185_v24  ;;  %v2939_v24 = vld [vmem:[%s3835_s26 + $0xc] sm:$0xff] }
 0x236   : > { %v2482_v19 = vmax.f32 %v2450_v0, 0.0  ;;  %v2198_v23 = vunpack.c.l.b16 %v2186_v42  ;;  %v2343_v44 = vpack.c.b16 %v2342_v58, %v2341_v48 }
 0x237   : > { %v2091_v45 = vpop.f32.mrf.mxu2 }
 0x238   : > { %2514 = vst [vmem:[%s4057_s29 + $0x58] sm:$0xff] %v2482_v19  ;;  %v2153_v21 = vadd.f32 %v2091_v45, %v2020_v52  ;;  %v2250_v34 = vpop.f32.mrf.mxu3  ;;  %v2200_v43 = vpack.c.b16 %v2199_v18, %v2198_v23 }
 0x239   : > { %v1960_v17 = vpop.f32.mrf.mxu1 }
 0x23a   : > { %v2312_v53 = vadd.f32 %v2250_v34, %v2153_v21  ;;  %v2391_v7 = vpop.f32.mrf.mxu0  ;;  %v2021_v5 = vadd.f32 %v1960_v17, %v3921_v41 }
 0x23c   : > { %v2451_v38 = vadd.f32 %v2389_v31, %v2312_v53 }
 0x23e   : > { %v2483_v9 = vmax.f32 %v2451_v38, 0.0 }
 0x23f   : > { %v2093_v56 = vpop.f32.mrf.mxu2 }
 0x240   : > { %2515 = vst [vmem:[%s4057_s29 + $0x60] sm:$0xff] %v2483_v9  ;;  %v2154_v6 = vadd.f32 %v2093_v56, %v2021_v5  ;;  %v2252_v15 = vpop.f32.mrf.mxu3 }
 0x241   : > { %v1963_v32 = vpop.f32.mrf.mxu1 }
 0x242   : > { %v2313_v36 = vadd.f32 %v2252_v15, %v2154_v6  ;;  %v2394_v22 = vpop.f32.mrf.mxu0  ;;  %v2022_v10 = vadd.f32 %v1963_v32, %v3928_v26 }
 0x244   : > { %v2452_v50 = vadd.f32 %v2391_v7, %v2313_v36  ;;  %2864 = vmatmul.msk.bf16.gmra.mxu1 %vm467_vm1, %v1908_v47  ;;  %2884 = vmatmul.msk.bf16.gmra.mxu2 %vm467_vm1, %v2939_v24 }
 0x245   : > { %2900 = vmatmul.msk.bf16.gmra.mxu3 %vm467_vm1, %v2200_v43  ;;  %2917 = vmatmul.msk.bf16.gmra.mxu0 %vm467_vm1, %v2343_v44 }
 0x246   : > { %v2484_v41 = vmax.f32 %v2452_v50, 0.0 }
 0x247   : > { %v2096_v20 = vpop.f32.mrf.mxu2 }
 0x248   : > { %2516 = vst [vmem:[%s4057_s29 + $0x68] sm:$0xff] %v2484_v41  ;;  %v2155_v8 = vadd.f32 %v2096_v20, %v2022_v10  ;;  %v2255_v61 = vpop.f32.mrf.mxu3 }
 0x249   : > { %v1965_v57 = vpop.f32.mrf.mxu1 }
 0x24a   : > { %v2314_v13 = vadd.f32 %v2255_v61, %v2155_v8  ;;  %v2396_v2 = vpop.f32.mrf.mxu0  ;;  %v2023_v35 = vadd.f32 %v1965_v57, %v3935_v37 }
 0x24c   : > { %v2453_v31 = vadd.f32 %v2394_v22, %v2314_v13 }
 0x24e   : > { %v2485_v47 = vmax.f32 %v2453_v31, 0.0 }
 0x24f   : > { %v2098_v0 = vpop.f32.mrf.mxu2 }
 0x250   : > { %2517 = vst [vmem:[%s4057_s29 + $0x70] sm:$0xff] %v2485_v47  ;;  %v2156_v30 = vadd.f32 %v2098_v0, %v2023_v35  ;;  %v2257_v55 = vpop.f32.mrf.mxu3 }
 0x251   : > { %v1968_v60 = vpop.f32.mrf.mxu1 }
 0x252   : > { %v2315_v27 = vadd.f32 %v2257_v55, %v2156_v30  ;;  %v2399_v26 = vpop.f32.mrf.mxu0  ;;  %v2024_v39 = vadd.f32 %v1968_v60, %v3942_v11 }
 0x254   : > { %v2454_v19 = vadd.f32 %v2396_v2, %v2315_v27 }
 0x256   : > { %v2486_v52 = vmax.f32 %v2454_v19, 0.0 }
 0x257   : > { %v2101_v63 = vpop.f32.mrf.mxu2 }
 0x258   : > { %2518 = vst [vmem:[%s4057_s29 + $0x78] sm:$0xff] %v2486_v52  ;;  %v2157_v45 = vadd.f32 %v2101_v63, %v2024_v39  ;;  %v2260_v21 = vpop.f32.mrf.mxu3 }
 0x259   : > { %v1970_v34 = vpop.f32.mrf.mxu1 }
 0x25a   : > { %v2316_v17 = vadd.f32 %v2260_v21, %v2157_v45  ;;  %v2401_v37 = vpop.f32.mrf.mxu0  ;;  %v2025_v7 = vadd.f32 %v1970_v34, %v3949_v40 }
 0x25c   : > { %v2455_v42 = vadd.f32 %v2399_v26, %v2316_v17 }
 0x25e   : > { %v2487_v53 = vmax.f32 %v2455_v42, 0.0 }
 0x25f   : > { %v2103_v51 = vpop.f32.mrf.mxu2 }
 0x260   : > { %2519 = vst [vmem:[%s4057_s29 + $0x80] sm:$0xff] %v2487_v53  ;;  %v2158_v12 = vadd.f32 %v2103_v51, %v2025_v7  ;;  %v2262_v59 = vpop.f32.mrf.mxu3 }
 0x261   : > { %v1973_v38 = vpop.f32.mrf.mxu1 }
 0x262   : > { %v2317_v23 = vadd.f32 %v2262_v59, %v2158_v12  ;;  %v2404_v11 = vpop.f32.mrf.mxu0  ;;  %v2026_v58 = vadd.f32 %v1973_v38, %v3956_v3 }
 0x264   : > { %v2456_v18 = vadd.f32 %v2401_v37, %v2317_v23 }
 0x266   : > { %v2488_v48 = vmax.f32 %v2456_v18, 0.0 }
 0x267   : > { %v2106_v9 = vpop.f32.mrf.mxu2 }
 0x268   : > { %2520 = vst [vmem:[%s4057_s29 + $0x88] sm:$0xff] %v2488_v48  ;;  %v2159_v5 = vadd.f32 %v2106_v9, %v2026_v58  ;;  %v2265_v56 = vpop.f32.mrf.mxu3 }
 0x269   : > { %v1975_v6 = vpop.f32.mrf.mxu1 }
 0x26a   : > { %v2318_v15 = vadd.f32 %v2265_v56, %v2159_v5  ;;  %v2406_v40 = vpop.f32.mrf.mxu0  ;;  %v2027_v43 = vadd.f32 %v1975_v6, %v3963_v49 }
 0x26c   : > { %v2457_v24 = vadd.f32 %v2404_v11, %v2318_v15 }
 0x26e   : > { %v2489_v32 = vmax.f32 %v2457_v24, 0.0 }
 0x26f   : > { %v2108_v44 = vpop.f32.mrf.mxu2 }
 0x270   : > { %2521 = vst [vmem:[%s4057_s29 + $0x90] sm:$0xff] %v2489_v32  ;;  %v2160_v36 = vadd.f32 %v2108_v44, %v2027_v43  ;;  %v2267_v22 = vpop.f32.mrf.mxu3 }
 0x271   : > { %v1978_v50 = vpop.f32.mrf.mxu1 }
 0x272   : > { %v2319_v41 = vadd.f32 %v2267_v22, %v2160_v36  ;;  %v2409_v3 = vpop.f32.mrf.mxu0  ;;  %v2028_v8 = vadd.f32 %v1978_v50, %v3970_v4 }
 0x274   : > { %v2458_v10 = vadd.f32 %v2406_v40, %v2319_v41 }
 0x276   : > { %v2490_v20 = vmax.f32 %v2458_v10, 0.0 }
 0x277   : > { %v2111_v61 = vpop.f32.mrf.mxu2 }
 0x278   : > { %2522 = vst [vmem:[%s4057_s29 + $0x98] sm:$0xff] %v2490_v20  ;;  %v2161_v57 = vadd.f32 %v2111_v61, %v2028_v8  ;;  %v2270_v13 = vpop.f32.mrf.mxu3 }
 0x279   : > { %v1980_v2 = vpop.f32.mrf.mxu1 }
 0x27a   : > { %v2320_v31 = vadd.f32 %v2270_v13, %v2161_v57  ;;  %v2411_v49 = vpop.f32.mrf.mxu0  ;;  %v2029_v0 = vadd.f32 %v1980_v2, %v3977_v29  ;;  %v4289_v2 = vld [vmem:[#allocation13_spill] sm:$0xff] }
 0x27c   : > { %v2459_v47 = vadd.f32 %v2409_v3, %v2320_v31 }
 0x27e   : > { %v2491_v35 = vmax.f32 %v2459_v47, 0.0 }
 0x27f   : > { %v2113_v30 = vpop.f32.mrf.mxu2 }
 0x280   : > { %2523 = vst [vmem:[%s4057_s29 + $0xa0] sm:$0xff] %v2491_v35  ;;  %v2162_v55 = vadd.f32 %v2113_v30, %v2029_v0  ;;  %v2272_v60 = vpop.f32.mrf.mxu3 }
 0x281   : > { %v1983_v27 = vpop.f32.mrf.mxu1 }
 0x282   : > { %v2321_v26 = vadd.f32 %v2272_v60, %v2162_v55  ;;  %v2414_v4 = vpop.f32.mrf.mxu0  ;;  %v2030_v39 = vadd.f32 %v1983_v27, %v3984_v62 }
 0x284   : > { %v2460_v19 = vadd.f32 %v2411_v49, %v2321_v26 }
 0x286   : > { %v2492_v52 = vmax.f32 %v2460_v19, 0.0 }
 0x287   : > { %v2116_v63 = vpop.f32.mrf.mxu2 }
 0x288   : > { %2524 = vst [vmem:[%s4057_s29 + $0xa8] sm:$0xff] %v2492_v52  ;;  %v2163_v45 = vadd.f32 %v2116_v63, %v2030_v39  ;;  %v2275_v21 = vpop.f32.mrf.mxu3 }
 0x289   : > { %v1985_v34 = vpop.f32.mrf.mxu1 }
 0x28a   : > { %v2322_v17 = vadd.f32 %v2275_v21, %v2163_v45  ;;  %v2416_v29 = vpop.f32.mrf.mxu0  ;;  %v2031_v53 = vadd.f32 %v1985_v34, %v3991_v25 }
 0x28c   : > { %v2461_v37 = vadd.f32 %v2414_v4, %v2322_v17 }
 0x28e   : > { %v2493_v42 = vmax.f32 %v2461_v37, 0.0 }
 0x28f   : > { %v2118_v7 = vpop.f32.mrf.mxu2 }
 0x290   : > { %2525 = vst [vmem:[%s4057_s29 + $0xb0] sm:$0xff] %v2493_v42  ;;  %v2164_v51 = vadd.f32 %v2118_v7, %v2031_v53  ;;  %v2277_v12 = vpop.f32.mrf.mxu3 }
 0x291   : > { %v1988_v59 = vpop.f32.mrf.mxu1 }
 0x292   : > { %v2323_v38 = vadd.f32 %v2277_v12, %v2164_v51  ;;  %v2419_v62 = vpop.f32.mrf.mxu0  ;;  %v2032_v18 = vadd.f32 %v1988_v59, %v3998_v1 }
 0x294   : > { %v2462_v23 = vadd.f32 %v2416_v29, %v2323_v38 }
 0x296   : > { %v2494_v11 = vmax.f32 %v2462_v23, 0.0 }
 0x297   : > { %v2121_v48 = vpop.f32.mrf.mxu2 }
 0x298   : > { %2526 = vst [vmem:[%s4057_s29 + $0xb8] sm:$0xff] %v2494_v11  ;;  %v2165_v58 = vadd.f32 %v2121_v48, %v2032_v18  ;;  %v2280_v9 = vpop.f32.mrf.mxu3 }
 0x299   : > { %v1990_v5 = vpop.f32.mrf.mxu1 }
 0x29a   : > { %v2324_v56 = vadd.f32 %v2280_v9, %v2165_v58  ;;  %v2421_v25 = vpop.f32.mrf.mxu0  ;;  %v2033_v40 = vadd.f32 %v1990_v5, %v4005_v33 }
 0x29c   : > { %v2463_v6 = vadd.f32 %v2419_v62, %v2324_v56 }
 0x29e   : > { %v2495_v15 = vmax.f32 %v2463_v6, 0.0 }
 0x29f   : > { %v2123_v24 = vpop.f32.mrf.mxu2 }
 0x2a0   : > { %2527 = vst [vmem:[%s4057_s29 + $0xc0] sm:$0xff] %v2495_v15  ;;  %v2166_v32 = vadd.f32 %v2123_v24, %v2033_v40  ;;  %v2282_v43 = vpop.f32.mrf.mxu3 }
 0x2a1   : > { %v1993_v44 = vpop.f32.mrf.mxu1 }
 0x2a2   : > { %v2325_v36 = vadd.f32 %v2282_v43, %v2166_v32  ;;  %v2424_v1 = vpop.f32.mrf.mxu0  ;;  %v2034_v41 = vadd.f32 %v1993_v44, %v4012_v54 }
 0x2a4   : > { %v2464_v22 = vadd.f32 %v2421_v25, %v2325_v36 }
 0x2a6   : > { %v2496_v50 = vmax.f32 %v2464_v22, 0.0 }
 0x2a7   : > { %v2126_v3 = vpop.f32.mrf.mxu2 }
 0x2a8   : > { %2528 = vst [vmem:[%s4057_s29 + $0xc8] sm:$0xff] %v2496_v50  ;;  %v2167_v10 = vadd.f32 %v2126_v3, %v2034_v41  ;;  %v2285_v20 = vpop.f32.mrf.mxu3 }
 0x2a9   : > { %v1995_v8 = vpop.f32.mrf.mxu1 }
 0x2aa   : > { %v2326_v61 = vadd.f32 %v2285_v20, %v2167_v10  ;;  %v2426_v33 = vpop.f32.mrf.mxu0  ;;  %v2035_v31 = vadd.f32 %v1995_v8, %v4289_v2 }
 0x2ac   : > { %v2465_v57 = vadd.f32 %v2424_v1, %v2326_v61 }
 0x2ae   : > { %v2497_v13 = vmax.f32 %v2465_v57, 0.0 }
 0x2af   : > { %v2128_v49 = vpop.f32.mrf.mxu2 }
 0x2b0   : > { %2529 = vst [vmem:[%s4057_s29 + $0xd0] sm:$0xff] %v2497_v13  ;;  %v2168_v47 = vadd.f32 %v2128_v49, %v2035_v31  ;;  %v2287_v35 = vpop.f32.mrf.mxu3 }
 0x2b1   : > { %v1998_v0 = vpop.f32.mrf.mxu1 }
 0x2b2   : > { %v2327_v30 = vadd.f32 %v2287_v35, %v2168_v47  ;;  %v2429_v55 = vpop.f32.mrf.mxu0  ;;  %v2036_v27 = vadd.f32 %v1998_v0, %v4026_v28 }
 0x2b4   : > { %v2466_v54 = vadd.f32 %v2426_v33, %v2327_v30 }
 0x2b6   : > { %v2498_v60 = vmax.f32 %v2466_v54, 0.0 }
 0x2b7   : > { %v2131_v26 = vpop.f32.mrf.mxu2 }
 0x2b8   : > { %2530 = vst [vmem:[%s4057_s29 + $0xd8] sm:$0xff] %v2498_v60  ;;  %v2169_v4 = vadd.f32 %v2131_v26, %v2036_v27  ;;  %v2290_v19 = vpop.f32.mrf.mxu3 }
 0x2b9   : > { %v2000_v52 = vpop.f32.mrf.mxu1 }
 0x2ba   : > { %v2328_v39 = vadd.f32 %v2290_v19, %v2169_v4  ;;  %v2037_v21 = vadd.f32 %v2000_v52, %v4033_v14  ;;  %v2431_v34 = vpop.f32.mrf.mxu0 }
 0x2bc   : > { %v2467_v63 = vadd.f32 %v2429_v55, %v2328_v39 }
 0x2be   : > { %v2499_v45 = vmax.f32 %v2467_v63, 0.0 }
 0x2bf   : > { %v2133_v17 = vpop.f32.mrf.mxu2 }
 0x2c0   : > { %2531 = vst [vmem:[%s4057_s29 + $0xe0] sm:$0xff] %v2499_v45  ;;  %v2170_v29 = vadd.f32 %v2133_v17, %v2037_v21  ;;  %v2292_v37 = vpop.f32.mrf.mxu3 }
 0x2c1   : > { %v2003_v42 = vpop.f32.mrf.mxu1 }
 0x2c2   : > { %v2329_v53 = vadd.f32 %v2292_v37, %v2170_v29  ;;  %v2038_v51 = vadd.f32 %v2003_v42, %v4040_v46  ;;  %v2434_v62 = vpop.f32.mrf.mxu0 }
 0x2c4   : > { %v2468_v28 = vadd.f32 %v2431_v34, %v2329_v53 }
 0x2c6   : > { %v2500_v7 = vmax.f32 %v2468_v28, 0.0 }
 0x2c7   : > { %v2136_v12 = vpop.f32.mrf.mxu2 }
 0x2c8   : > { %2532 = vst [vmem:[%s4057_s29 + $0xe8] sm:$0xff] %v2500_v7  ;;  %v2171_v59 = vadd.f32 %v2136_v12, %v2038_v51  ;;  %v2295_v38 = vpop.f32.mrf.mxu3 }
 0x2c9   : > { %v2005_v14 = vpop.f32.mrf.mxu1 }
 0x2ca   : > { %v2330_v23 = vadd.f32 %v2295_v38, %v2171_v59  ;;  %v2039_v48 = vadd.f32 %v2005_v14, %v4047_v16  ;;  %v2436_v25 = vpop.f32.mrf.mxu0 }
 0x2cc   : > { %v2469_v11 = vadd.f32 %v2434_v62, %v2330_v23 }
 0x2ce   : > { %v2501_v18 = vmax.f32 %v2469_v11, 0.0 }
 0x2cf   : > { %v2138_v58 = vpop.f32.mrf.mxu2 }
 0x2d0   : > { %2533 = vst [vmem:[%s4057_s29 + $0xf0] sm:$0xff] %v2501_v18  ;;  %v2172_v9 = vadd.f32 %v2138_v58, %v2039_v48  ;;  %v2297_v5 = vpop.f32.mrf.mxu3 }
 0x2d2   : > { %v2331_v56 = vadd.f32 %v2297_v5, %v2172_v9 }
 0x2d4   : > { %v2470_v6 = vadd.f32 %v2436_v25, %v2331_v56 }
 0x2d6   : > { %v2502_v46 = vmax.f32 %v2470_v6, 0.0 }
 0x2d8   : > { %2534 = vst [vmem:[%s4057_s29 + $0xf8] sm:$0xff] %v2502_v46 }
 0x2d9 PF: > { %s14_s17 = sadd.s32 1, %s3007_s17   ;;  %s4290_s15 = smov %s3003_s16 }
 0x2da   : > { %p11_p6 = scmp.ge.s32.totalorder %s14_s17, 4   ;;  %s4291_s16 = smov %s4293_s18 }
 0x2dc   :  { %13 = sbr.rel (!%p11_p6) target bundleno = 2 (0x2), region = 75 }

</bundles_post_ra>
